<compile_context>
chip_gen: v5e
topology: v5e:2x2
jax: 0.10.0
libtpu: 0.0.40
codegen_flags: <defaults>
</compile_context>

<pallas_src>
import functools

import jax
import jax.numpy as jnp
import numpy as np
from jax.experimental import pallas as pl
from jax.experimental.pallas import tpu as pltpu


# ----------------------------------------------------------------------------
# Host-side glue: stacked DFT tables (cached once per (s, modes))
# ----------------------------------------------------------------------------
@functools.lru_cache(maxsize=None)
def dft_matrices(s, modes):
    if modes > s // 2 + 1:
        raise ValueError(f"modes={modes} must be <= s//2+1={s // 2 + 1}")
    n = np.arange(s)[:, None]                      # (s, 1)
    k = np.arange(modes)[None, :]                  # (1, M)
    ang = 2.0 * np.pi * n * k / s                  # (s, M)
    cos_t = np.cos(ang).T                          # (M, s)   rfft real part
    nsin_t = -np.sin(ang).T                        # (M, s)   rfft imag part
    fwd = np.concatenate([cos_t, nsin_t], axis=0)  # (2M, s)  single forward-DFT table
    coef = np.full((modes,), 2.0)
    coef[0] = 1.0
    if s % 2 == 0 and modes == s // 2 + 1:
        coef[-1] = 1.0
    icos = np.cos(ang) * coef[None, :] / s         # (s, M)
    isin = -np.sin(ang) * coef[None, :] / s        # (s, M)
    inv = np.concatenate([icos, isin], axis=1)     # (s, 2M)  single inverse-DFT table
    return jnp.asarray(fwd, jnp.float32), jnp.asarray(inv, jnp.float32)


# ----------------------------------------------------------------------------
# Mode mixing: MXU contraction batched over modes (with unrolled-dot fallback)
# ----------------------------------------------------------------------------
def _mode_mix(x2m, v2, use_batched, precision):
    """x2m: (M, 2Cin) = [xr | xi];  v2: (M, 2Cin, 2Cout) = [[Ar, Ai], [-Ai, Ar]].
    Returns (M, 2Cout) = [out_r | out_i]."""
    if use_batched:
        return jnp.einsum("mc,mco->mo", x2m, v2,
                          precision=precision, preferred_element_type=jnp.float32)
    # Fallback: same contraction, statically unrolled into per-mode 2-D MXU dots.
    rows = [jnp.dot(x2m[k:k + 1, :], v2[k], precision=precision,
                    preferred_element_type=jnp.float32)
            for k in range(v2.shape[0])]
    return jnp.concatenate(rows, axis=0)


@functools.lru_cache(maxsize=None)
def _batched_mode_mix_supported(modes, c2, o2):
    """Probe whether Mosaic lowers the mode-batched dot_general on this jax build."""
    def probe(a_ref, b_ref, o_ref):
        o_ref[...] = _mode_mix(a_ref[...], b_ref[...], True, jax.lax.Precision.HIGHEST)

    try:
        a = jnp.zeros((modes, c2), jnp.float32)
        b = jnp.zeros((modes, c2, o2), jnp.float32)
        out = pl.pallas_call(
            probe, out_shape=jax.ShapeDtypeStruct((modes, o2), jnp.float32))(a, b)
        jax.block_until_ready(out)
        return True
    except Exception:
        return False


# ----------------------------------------------------------------------------
# Fused whole-network kernel (one batch element per grid step)
# ----------------------------------------------------------------------------
def _fnn1d_kernel(x_ref, f_ref, if_ref, w0_ref, b0_ref, *rest,
                  n_layers, modes, use_batched_mix, precision):
    layer_refs = rest[: 3 * n_layers]
    w1_ref, b1_ref, w2_ref, b2_ref, o_ref = rest[3 * n_layers:]

    f32 = jnp.float32
    f_mat = f_ref[...]     # (2M, s)  stacked [cos ; -sin]
    if_mat = if_ref[...]   # (s, 2M)  stacked [icos | isin]

    # fc0: lift (s, 2) -> (s, W); rows = spatial points, channels on lanes.
    h = jnp.dot(x_ref[...], w0_ref[...], precision=precision,
                preferred_element_type=f32) + b0_ref[...]

    # Fourier layers: activation h stays resident in VMEM/vregs across layers.
    for l in range(n_layers):
        v2_ref, wp_ref, bp_ref = layer_refs[3 * l: 3 * l + 3]
        cout = wp_ref.shape[1]

        # Truncated rfft: ONE stacked real-DFT matmul, rows [0,M)=Re, [M,2M)=Im.
        xhat = jnp.dot(f_mat, h, precision=precision,
                       preferred_element_type=f32)                       # (2M, cin)
        x2m = jnp.concatenate([xhat[:modes, :], xhat[modes:, :]], axis=1)  # (M, 2cin)

        # Per-mode complex channel mix on the MXU (batched over modes).
        out2 = _mode_mix(x2m, v2_ref[...], use_batched_mix, precision)   # (M, 2cout)
        out_stack = jnp.concatenate(
            [out2[:, :cout], out2[:, cout:]], axis=0)                    # (2M, cout)

        # Truncated irfft (high modes implicitly zero): ONE matmul over 2M.
        x_spec = jnp.dot(if_mat, out_stack, precision=precision,
                         preferred_element_type=f32)                     # (s, cout)

        # Conv1d(kernel_size=1) == channel matmul + bias.
        x_point = jnp.dot(h, wp_ref[...], precision=precision,
                          preferred_element_type=f32) + bp_ref[...]      # (s, cout)

        h = x_spec + x_point
        if l != n_layers - 1:
            h = jnp.maximum(h, 0.0)

    # Fused projection head: fc1 -> relu -> fc2 (the (s,128) intermediate never
    # leaves VMEM, no separate lane-width-1 memory-bound kernel).
    h = jnp.dot(h, w1_ref[...], precision=precision,
                preferred_element_type=f32) + b1_ref[...]
    h = jnp.maximum(h, 0.0)
    y = jnp.dot(h, w2_ref[...], precision=precision,
                preferred_element_type=f32) + b2_ref[...]
    o_ref[...] = y.astype(o_ref.dtype)


def fnn1d_forward(x, packed, precision=jax.lax.Precision.HIGHEST):
    B, s, cin0 = x.shape
    f_mat, if_mat = packed["dft_fwd"], packed["dft_inv"]
    modes = f_mat.shape[0] // 2
    layer_weights = packed["layers"]
    n_layers = len(layer_weights)

    v2_0 = layer_weights[0][0]
    use_batched = _batched_mode_mix_supported(
        int(v2_0.shape[0]), int(v2_0.shape[1]), int(v2_0.shape[2]))

    def full(arr):
        shp = tuple(arr.shape)
        # Constant index map -> block fetched once, kept resident across the grid.
        # (Could additionally request pipeline_mode=pl.Buffered(1) to drop the
        #  second buffer on VMEM-tight v7x configs.)
        return pl.BlockSpec(shp, lambda b, _r=len(shp): (0,) * _r)

    inputs = [x, f_mat, if_mat, packed["w0"], packed["b0"]]
    in_specs = [
        pl.BlockSpec((pl.Squeezed(), s, cin0), lambda b: (b, 0, 0)),   # x: one batch row
        full(f_mat), full(if_mat), full(packed["w0"]), full(packed["b0"]),
    ]
    for (v2, wp, bp) in layer_weights:
        inputs += [v2, wp, bp]
        in_specs += [full(v2), full(wp), full(bp)]
    inputs += [packed["w1"], packed["b1"], packed["w2"], packed["b2"]]
    in_specs += [full(packed["w1"]), full(packed["b1"]),
                 full(packed["w2"]), full(packed["b2"])]

    kernel = functools.partial(
        _fnn1d_kernel, n_layers=n_layers, modes=modes,
        use_batched_mix=use_batched, precision=precision)

    return pl.pallas_call(
        kernel,
        out_shape=jax.ShapeDtypeStruct((B, s, 1), x.dtype),
        grid=(B,),
        in_specs=in_specs,
        out_specs=pl.BlockSpec((pl.Squeezed(), s, 1), lambda b: (b, 0, 0)),
        compiler_params=pltpu.CompilerParams(
            dimension_semantics=("parallel",),          # one batch element per TC step
            vmem_limit_bytes=32 * 1024 * 1024,          # explicit cap; fits v7x (64 MiB)
        ),
    )(*inputs)


# ----------------------------------------------------------------------------
# Parameters (deterministic init mirroring the PyTorch module's structure)
# ----------------------------------------------------------------------------
def init_params(key, modes, width, layers=None):
    if layers is None:
        layers = [width] * 4
    keys = iter(jax.random.split(key, 32))
    params = {}
    # fc0: Linear(2, layers[-1])
    params["w0"] = jax.random.uniform(next(keys), (2, layers[-1]), jnp.float32, -0.5, 0.5)
    params["b0"] = jax.random.uniform(next(keys), (1, layers[-1]), jnp.float32, -0.5, 0.5)
    # Fourier layers: SpectralConv1d + Conv1d(kernel=1) per (in, out) pair.
    fourier = []
    for cin, cout in zip(layers, layers[1:]):
        scale = 1.0 / (cin * cout)
        # Complex spectral weight, stored as real/imag (modes, cin, cout).
        ar = scale * jax.random.uniform(next(keys), (modes, cin, cout), jnp.float32)
        ai = scale * jax.random.uniform(next(keys), (modes, cin, cout), jnp.float32)
        wp = jax.random.uniform(next(keys), (cin, cout), jnp.float32, -0.3, 0.3)
        bp = jax.random.uniform(next(keys), (1, cout), jnp.float32, -0.1, 0.1)
        fourier.append((ar, ai, wp, bp))
    params["fourier"] = fourier
    # fc1: Linear(layers[-1], 128); fc2: Linear(128, 1)
    params["w1"] = jax.random.uniform(next(keys), (layers[-1], 128), jnp.float32, -0.2, 0.2)
    params["b1"] = jax.random.uniform(next(keys), (1, 128), jnp.float32, -0.2, 0.2)
    params["w2"] = jax.random.uniform(next(keys), (128, 1), jnp.float32, -0.2, 0.2)
    params["b2"] = jax.random.uniform(next(keys), (1, 1), jnp.float32, -0.2, 0.2)
    return params


def pack_params(params, s, modes):
    """One-time host-side packing (hoisted out of the forward pass)."""
    f_mat, if_mat = dft_matrices(s, modes)
    layer_weights = []
    for (ar, ai, wp, bp) in params["fourier"]:
        # V2[k] = [[Ar, Ai], [-Ai, Ar]]  -> (M, 2Cin, 2Cout), so that
        # [xr | xi] @ V2[k] = [out_r | out_i].
        top = jnp.concatenate([ar, ai], axis=2)
        bot = jnp.concatenate([-ai, ar], axis=2)
        v2 = jnp.concatenate([top, bot], axis=1)
        layer_weights.append((v2, wp, bp))
    return {
        "dft_fwd": f_mat, "dft_inv": if_mat,
        "w0": params["w0"], "b0": params["b0"],
        "layers": layer_weights,
        "w1": params["w1"], "b1": params["b1"],
        "w2": params["w2"], "b2": params["b2"],
    }


# ----------------------------------------------------------------------------
# Pure-JAX reference mirroring the PyTorch forward (NCW conv layout, real FFT)
# ----------------------------------------------------------------------------
def fnn1d_reference(x, params, modes):
    hi = jax.lax.Precision.HIGHEST
    B, s, _ = x.shape
    h = jnp.matmul(x, params["w0"], precision=hi) + params["b0"]     # (B, s, W)
    h = jnp.transpose(h, (0, 2, 1))                                  # (B, C, s)
    n = len(params["fourier"])
    for i, (ar, ai, wp, bp) in enumerate(params["fourier"]):
        w_c = (jnp.transpose(ar, (1, 2, 0))
               + 1j * jnp.transpose(ai, (1, 2, 0)))                  # (Cin, Cout, M)
        x_ft = jnp.fft.rfft(h, axis=-1)                              # (B, Cin, s//2+1)
        out_k = jnp.einsum("bck,cok->bok", x_ft[:, :, :modes], w_c, precision=hi)
        out_ft = jnp.zeros((B, w_c.shape[1], s // 2 + 1), dtype=out_k.dtype)
        out_ft = out_ft.at[:, :, :modes].set(out_k)
        x1 = jnp.fft.irfft(out_ft, n=s, axis=-1)
        x2 = jnp.einsum("bcn,co->bon", h, wp, precision=hi) + bp.reshape(1, -1, 1)
        h = x1 + x2
        if i != n - 1:
            h = jax.nn.relu(h)
    h = jnp.transpose(h, (0, 2, 1))                                  # (B, s, C)
    h = jax.nn.relu(jnp.matmul(h, params["w1"], precision=hi) + params["b1"])
    return jnp.matmul(h, params["w2"], precision=hi) + params["b2"]


if __name__ == "__main__":
    modes, width = 4, 8
    B, s = 2, 16

    key = jax.random.PRNGKey(0)
    kx, kp = jax.random.split(key)
    x = jax.random.normal(kx, (B, s, 2), jnp.float32)
    params = init_params(kp, modes, width)

    # Host-side packing + DFT tables built once, outside the forward pass.
    packed = pack_params(params, s, modes)

    out = fnn1d_forward(x, packed)
    out = jax.block_until_ready(out)

    ref = fnn1d_reference(x, params, modes)
    assert out.shape == (B, s, 1)
    np.testing.assert_allclose(np.asarray(out), np.asarray(ref), rtol=2e-4, atol=2e-4)

    print("KERNEL_OK")
</pallas_src>

<mosaic_0001>
module attributes {stable_mosaic.version = 11 : i64} {
  func.func @_fnn1d_kernel(%arg0: i32, %arg1: memref<1x16x2xf32, #tpu.memory_space<vmem>>, %arg2: memref<8x16xf32, #tpu.memory_space<vmem>>, %arg3: memref<16x8xf32, #tpu.memory_space<vmem>>, %arg4: memref<2x8xf32, #tpu.memory_space<vmem>>, %arg5: memref<1x8xf32, #tpu.memory_space<vmem>>, %arg6: memref<4x16x16xf32, #tpu.memory_space<vmem>>, %arg7: memref<8x8xf32, #tpu.memory_space<vmem>>, %arg8: memref<1x8xf32, #tpu.memory_space<vmem>>, %arg9: memref<4x16x16xf32, #tpu.memory_space<vmem>>, %arg10: memref<8x8xf32, #tpu.memory_space<vmem>>, %arg11: memref<1x8xf32, #tpu.memory_space<vmem>>, %arg12: memref<4x16x16xf32, #tpu.memory_space<vmem>>, %arg13: memref<8x8xf32, #tpu.memory_space<vmem>>, %arg14: memref<1x8xf32, #tpu.memory_space<vmem>>, %arg15: memref<8x128xf32, #tpu.memory_space<vmem>>, %arg16: memref<1x128xf32, #tpu.memory_space<vmem>>, %arg17: memref<128x1xf32, #tpu.memory_space<vmem>>, %arg18: memref<1x1xf32, #tpu.memory_space<vmem>>, %arg19: memref<1x16x1xf32, #tpu.memory_space<vmem>>) attributes {dimension_semantics = [#tpu.dimension_semantics<parallel>], iteration_bounds = array<i64: 2>, scalar_prefetch = 0 : i64, scratch_operands = 0 : i64, tpu.core_type = #tpu.core_type<tc>, window_params = [{transform_indices = @transform_0, window_bounds = array<i64: 1, 16, 2>}, {pipeline_mode = #tpu.pipeline_mode<synchronous>, transform_indices = @transform_1, window_bounds = array<i64: 8, 16>}, {pipeline_mode = #tpu.pipeline_mode<synchronous>, transform_indices = @transform_2, window_bounds = array<i64: 16, 8>}, {pipeline_mode = #tpu.pipeline_mode<synchronous>, transform_indices = @transform_3, window_bounds = array<i64: 2, 8>}, {pipeline_mode = #tpu.pipeline_mode<synchronous>, transform_indices = @transform_4, window_bounds = array<i64: 1, 8>}, {pipeline_mode = #tpu.pipeline_mode<synchronous>, transform_indices = @transform_5, window_bounds = array<i64: 4, 16, 16>}, {pipeline_mode = #tpu.pipeline_mode<synchronous>, transform_indices = @transform_6, window_bounds = array<i64: 8, 8>}, {pipeline_mode = #tpu.pipeline_mode<synchronous>, transform_indices = @transform_7, window_bounds = array<i64: 1, 8>}, {pipeline_mode = #tpu.pipeline_mode<synchronous>, transform_indices = @transform_8, window_bounds = array<i64: 4, 16, 16>}, {pipeline_mode = #tpu.pipeline_mode<synchronous>, transform_indices = @transform_9, window_bounds = array<i64: 8, 8>}, {pipeline_mode = #tpu.pipeline_mode<synchronous>, transform_indices = @transform_10, window_bounds = array<i64: 1, 8>}, {pipeline_mode = #tpu.pipeline_mode<synchronous>, transform_indices = @transform_11, window_bounds = array<i64: 4, 16, 16>}, {pipeline_mode = #tpu.pipeline_mode<synchronous>, transform_indices = @transform_12, window_bounds = array<i64: 8, 8>}, {pipeline_mode = #tpu.pipeline_mode<synchronous>, transform_indices = @transform_13, window_bounds = array<i64: 1, 8>}, {pipeline_mode = #tpu.pipeline_mode<synchronous>, transform_indices = @transform_14, window_bounds = array<i64: 8, 128>}, {pipeline_mode = #tpu.pipeline_mode<synchronous>, transform_indices = @transform_15, window_bounds = array<i64: 1, 128>}, {pipeline_mode = #tpu.pipeline_mode<synchronous>, transform_indices = @transform_16, window_bounds = array<i64: 128, 1>}, {pipeline_mode = #tpu.pipeline_mode<synchronous>, transform_indices = @transform_17, window_bounds = array<i64: 1, 1>}, {transform_indices = @transform_18, window_bounds = array<i64: 1, 16, 1>}]} {
    %c0 = arith.constant 0 : index
    %c0_0 = arith.constant 0 : index
    %0 = vector.load %arg2[%c0, %c0_0] : memref<8x16xf32, #tpu.memory_space<vmem>>, vector<8x16xf32>
    %c0_1 = arith.constant 0 : index
    %c0_2 = arith.constant 0 : index
    %1 = vector.load %arg3[%c0_1, %c0_2] : memref<16x8xf32, #tpu.memory_space<vmem>>, vector<16x8xf32>
    %c0_3 = arith.constant 0 : index
    %c0_4 = arith.constant 0 : index
    %c0_5 = arith.constant 0 : index
    %2 = vector.load %arg1[%c0_3, %c0_4, %c0_5] : memref<1x16x2xf32, #tpu.memory_space<vmem>>, vector<1x16x2xf32>
    %3 = vector.shape_cast %2 : vector<1x16x2xf32> to vector<16x2xf32>
    %c0_6 = arith.constant 0 : index
    %c0_7 = arith.constant 0 : index
    %4 = vector.load %arg4[%c0_6, %c0_7] : memref<2x8xf32, #tpu.memory_space<vmem>>, vector<2x8xf32>
    %cst = arith.constant dense<0.000000e+00> : vector<16x8xf32>
    %5 = tpu.matmul %3, %4, %cst {dimension_numbers = #tpu.dot_dimension_numbers<[1], [0], [0], [1], [0, 0, 1, 1], [], []>, precision = #tpu.contract_precision<fp32>} : vector<16x2xf32>, vector<2x8xf32>, vector<16x8xf32> -> vector<16x8xf32>
    %c0_8 = arith.constant 0 : index
    %c0_9 = arith.constant 0 : index
    %6 = vector.load %arg5[%c0_8, %c0_9] : memref<1x8xf32, #tpu.memory_space<vmem>>, vector<1x8xf32>
    %7 = vector.broadcast %6 : vector<1x8xf32> to vector<16x8xf32>
    %8 = arith.addf %5, %7 : vector<16x8xf32>
    %cst_10 = arith.constant dense<0.000000e+00> : vector<8x8xf32>
    %9 = tpu.matmul %0, %8, %cst_10 {dimension_numbers = #tpu.dot_dimension_numbers<[1], [0], [0], [1], [0, 0, 1, 1], [], []>, precision = #tpu.contract_precision<fp32>} : vector<8x16xf32>, vector<16x8xf32>, vector<8x8xf32> -> vector<8x8xf32>
    %10 = vector.extract_strided_slice %9 {offsets = [0, 0], sizes = [4, 8], strides = [1, 1]} : vector<8x8xf32> to vector<4x8xf32>
    %11 = vector.extract_strided_slice %9 {offsets = [4, 0], sizes = [4, 8], strides = [1, 1]} : vector<8x8xf32> to vector<4x8xf32>
    %12 = tpu.concatenate %10, %11 in 1 : vector<4x8xf32>, vector<4x8xf32> -> vector<4x16xf32>
    %c0_11 = arith.constant 0 : index
    %c0_12 = arith.constant 0 : index
    %c0_13 = arith.constant 0 : index
    %13 = vector.load %arg6[%c0_11, %c0_12, %c0_13] : memref<4x16x16xf32, #tpu.memory_space<vmem>>, vector<4x16x16xf32>
    %14 = vector.extract_strided_slice %12 {offsets = [0, 0], sizes = [1, 16], strides = [1, 1]} : vector<4x16xf32> to vector<1x16xf32>
    %15 = vector.extract_strided_slice %13 {offsets = [0, 0, 0], sizes = [1, 16, 16], strides = [1, 1, 1]} : vector<4x16x16xf32> to vector<1x16x16xf32>
    %16 = vector.shape_cast %15 : vector<1x16x16xf32> to vector<16x16xf32>
    %cst_14 = arith.constant dense<0.000000e+00> : vector<1x16xf32>
    %17 = tpu.matmul %14, %16, %cst_14 {dimension_numbers = #tpu.dot_dimension_numbers<[1], [0], [0], [1], [0, 0, 1, 1], [], []>, precision = #tpu.contract_precision<fp32>} : vector<1x16xf32>, vector<16x16xf32>, vector<1x16xf32> -> vector<1x16xf32>
    %18 = vector.extract_strided_slice %12 {offsets = [1, 0], sizes = [1, 16], strides = [1, 1]} : vector<4x16xf32> to vector<1x16xf32>
    %19 = vector.extract_strided_slice %13 {offsets = [1, 0, 0], sizes = [1, 16, 16], strides = [1, 1, 1]} : vector<4x16x16xf32> to vector<1x16x16xf32>
    %20 = vector.shape_cast %19 : vector<1x16x16xf32> to vector<16x16xf32>
    %cst_15 = arith.constant dense<0.000000e+00> : vector<1x16xf32>
    %21 = tpu.matmul %18, %20, %cst_15 {dimension_numbers = #tpu.dot_dimension_numbers<[1], [0], [0], [1], [0, 0, 1, 1], [], []>, precision = #tpu.contract_precision<fp32>} : vector<1x16xf32>, vector<16x16xf32>, vector<1x16xf32> -> vector<1x16xf32>
    %22 = vector.extract_strided_slice %12 {offsets = [2, 0], sizes = [1, 16], strides = [1, 1]} : vector<4x16xf32> to vector<1x16xf32>
    %23 = vector.extract_strided_slice %13 {offsets = [2, 0, 0], sizes = [1, 16, 16], strides = [1, 1, 1]} : vector<4x16x16xf32> to vector<1x16x16xf32>
    %24 = vector.shape_cast %23 : vector<1x16x16xf32> to vector<16x16xf32>
    %cst_16 = arith.constant dense<0.000000e+00> : vector<1x16xf32>
    %25 = tpu.matmul %22, %24, %cst_16 {dimension_numbers = #tpu.dot_dimension_numbers<[1], [0], [0], [1], [0, 0, 1, 1], [], []>, precision = #tpu.contract_precision<fp32>} : vector<1x16xf32>, vector<16x16xf32>, vector<1x16xf32> -> vector<1x16xf32>
    %26 = vector.extract_strided_slice %12 {offsets = [3, 0], sizes = [1, 16], strides = [1, 1]} : vector<4x16xf32> to vector<1x16xf32>
    %27 = vector.extract_strided_slice %13 {offsets = [3, 0, 0], sizes = [1, 16, 16], strides = [1, 1, 1]} : vector<4x16x16xf32> to vector<1x16x16xf32>
    %28 = vector.shape_cast %27 : vector<1x16x16xf32> to vector<16x16xf32>
    %cst_17 = arith.constant dense<0.000000e+00> : vector<1x16xf32>
    %29 = tpu.matmul %26, %28, %cst_17 {dimension_numbers = #tpu.dot_dimension_numbers<[1], [0], [0], [1], [0, 0, 1, 1], [], []>, precision = #tpu.contract_precision<fp32>} : vector<1x16xf32>, vector<16x16xf32>, vector<1x16xf32> -> vector<1x16xf32>
    %30 = tpu.concatenate %17, %21, %25, %29 in 0 : vector<1x16xf32>, vector<1x16xf32>, vector<1x16xf32>, vector<1x16xf32> -> vector<4x16xf32>
    %31 = vector.extract_strided_slice %30 {offsets = [0, 0], sizes = [4, 8], strides = [1, 1]} : vector<4x16xf32> to vector<4x8xf32>
    %32 = vector.extract_strided_slice %30 {offsets = [0, 8], sizes = [4, 8], strides = [1, 1]} : vector<4x16xf32> to vector<4x8xf32>
    %33 = tpu.concatenate %31, %32 in 0 : vector<4x8xf32>, vector<4x8xf32> -> vector<8x8xf32>
    %cst_18 = arith.constant dense<0.000000e+00> : vector<16x8xf32>
    %34 = tpu.matmul %1, %33, %cst_18 {dimension_numbers = #tpu.dot_dimension_numbers<[1], [0], [0], [1], [0, 0, 1, 1], [], []>, precision = #tpu.contract_precision<fp32>} : vector<16x8xf32>, vector<8x8xf32>, vector<16x8xf32> -> vector<16x8xf32>
    %c0_19 = arith.constant 0 : index
    %c0_20 = arith.constant 0 : index
    %35 = vector.load %arg7[%c0_19, %c0_20] : memref<8x8xf32, #tpu.memory_space<vmem>>, vector<8x8xf32>
    %cst_21 = arith.constant dense<0.000000e+00> : vector<16x8xf32>
    %36 = tpu.matmul %8, %35, %cst_21 {dimension_numbers = #tpu.dot_dimension_numbers<[1], [0], [0], [1], [0, 0, 1, 1], [], []>, precision = #tpu.contract_precision<fp32>} : vector<16x8xf32>, vector<8x8xf32>, vector<16x8xf32> -> vector<16x8xf32>
    %c0_22 = arith.constant 0 : index
    %c0_23 = arith.constant 0 : index
    %37 = vector.load %arg8[%c0_22, %c0_23] : memref<1x8xf32, #tpu.memory_space<vmem>>, vector<1x8xf32>
    %38 = vector.broadcast %37 : vector<1x8xf32> to vector<16x8xf32>
    %39 = arith.addf %36, %38 : vector<16x8xf32>
    %40 = arith.addf %34, %39 : vector<16x8xf32>
    %cst_24 = arith.constant 0.000000e+00 : f32
    %41 = vector.broadcast %cst_24 : f32 to vector<16x8xf32>
    %42 = arith.maximumf %40, %41 : vector<16x8xf32>
    %cst_25 = arith.constant dense<0.000000e+00> : vector<8x8xf32>
    %43 = tpu.matmul %0, %42, %cst_25 {dimension_numbers = #tpu.dot_dimension_numbers<[1], [0], [0], [1], [0, 0, 1, 1], [], []>, precision = #tpu.contract_precision<fp32>} : vector<8x16xf32>, vector<16x8xf32>, vector<8x8xf32> -> vector<8x8xf32>
    %44 = vector.extract_strided_slice %43 {offsets = [0, 0], sizes = [4, 8], strides = [1, 1]} : vector<8x8xf32> to vector<4x8xf32>
    %45 = vector.extract_strided_slice %43 {offsets = [4, 0], sizes = [4, 8], strides = [1, 1]} : vector<8x8xf32> to vector<4x8xf32>
    %46 = tpu.concatenate %44, %45 in 1 : vector<4x8xf32>, vector<4x8xf32> -> vector<4x16xf32>
    %c0_26 = arith.constant 0 : index
    %c0_27 = arith.constant 0 : index
    %c0_28 = arith.constant 0 : index
    %47 = vector.load %arg9[%c0_26, %c0_27, %c0_28] : memref<4x16x16xf32, #tpu.memory_space<vmem>>, vector<4x16x16xf32>
    %48 = vector.extract_strided_slice %46 {offsets = [0, 0], sizes = [1, 16], strides = [1, 1]} : vector<4x16xf32> to vector<1x16xf32>
    %49 = vector.extract_strided_slice %47 {offsets = [0, 0, 0], sizes = [1, 16, 16], strides = [1, 1, 1]} : vector<4x16x16xf32> to vector<1x16x16xf32>
    %50 = vector.shape_cast %49 : vector<1x16x16xf32> to vector<16x16xf32>
    %cst_29 = arith.constant dense<0.000000e+00> : vector<1x16xf32>
    %51 = tpu.matmul %48, %50, %cst_29 {dimension_numbers = #tpu.dot_dimension_numbers<[1], [0], [0], [1], [0, 0, 1, 1], [], []>, precision = #tpu.contract_precision<fp32>} : vector<1x16xf32>, vector<16x16xf32>, vector<1x16xf32> -> vector<1x16xf32>
    %52 = vector.extract_strided_slice %46 {offsets = [1, 0], sizes = [1, 16], strides = [1, 1]} : vector<4x16xf32> to vector<1x16xf32>
    %53 = vector.extract_strided_slice %47 {offsets = [1, 0, 0], sizes = [1, 16, 16], strides = [1, 1, 1]} : vector<4x16x16xf32> to vector<1x16x16xf32>
    %54 = vector.shape_cast %53 : vector<1x16x16xf32> to vector<16x16xf32>
    %cst_30 = arith.constant dense<0.000000e+00> : vector<1x16xf32>
    %55 = tpu.matmul %52, %54, %cst_30 {dimension_numbers = #tpu.dot_dimension_numbers<[1], [0], [0], [1], [0, 0, 1, 1], [], []>, precision = #tpu.contract_precision<fp32>} : vector<1x16xf32>, vector<16x16xf32>, vector<1x16xf32> -> vector<1x16xf32>
    %56 = vector.extract_strided_slice %46 {offsets = [2, 0], sizes = [1, 16], strides = [1, 1]} : vector<4x16xf32> to vector<1x16xf32>
    %57 = vector.extract_strided_slice %47 {offsets = [2, 0, 0], sizes = [1, 16, 16], strides = [1, 1, 1]} : vector<4x16x16xf32> to vector<1x16x16xf32>
    %58 = vector.shape_cast %57 : vector<1x16x16xf32> to vector<16x16xf32>
    %cst_31 = arith.constant dense<0.000000e+00> : vector<1x16xf32>
    %59 = tpu.matmul %56, %58, %cst_31 {dimension_numbers = #tpu.dot_dimension_numbers<[1], [0], [0], [1], [0, 0, 1, 1], [], []>, precision = #tpu.contract_precision<fp32>} : vector<1x16xf32>, vector<16x16xf32>, vector<1x16xf32> -> vector<1x16xf32>
    %60 = vector.extract_strided_slice %46 {offsets = [3, 0], sizes = [1, 16], strides = [1, 1]} : vector<4x16xf32> to vector<1x16xf32>
    %61 = vector.extract_strided_slice %47 {offsets = [3, 0, 0], sizes = [1, 16, 16], strides = [1, 1, 1]} : vector<4x16x16xf32> to vector<1x16x16xf32>
    %62 = vector.shape_cast %61 : vector<1x16x16xf32> to vector<16x16xf32>
    %cst_32 = arith.constant dense<0.000000e+00> : vector<1x16xf32>
    %63 = tpu.matmul %60, %62, %cst_32 {dimension_numbers = #tpu.dot_dimension_numbers<[1], [0], [0], [1], [0, 0, 1, 1], [], []>, precision = #tpu.contract_precision<fp32>} : vector<1x16xf32>, vector<16x16xf32>, vector<1x16xf32> -> vector<1x16xf32>
    %64 = tpu.concatenate %51, %55, %59, %63 in 0 : vector<1x16xf32>, vector<1x16xf32>, vector<1x16xf32>, vector<1x16xf32> -> vector<4x16xf32>
    %65 = vector.extract_strided_slice %64 {offsets = [0, 0], sizes = [4, 8], strides = [1, 1]} : vector<4x16xf32> to vector<4x8xf32>
    %66 = vector.extract_strided_slice %64 {offsets = [0, 8], sizes = [4, 8], strides = [1, 1]} : vector<4x16xf32> to vector<4x8xf32>
    %67 = tpu.concatenate %65, %66 in 0 : vector<4x8xf32>, vector<4x8xf32> -> vector<8x8xf32>
    %cst_33 = arith.constant dense<0.000000e+00> : vector<16x8xf32>
    %68 = tpu.matmul %1, %67, %cst_33 {dimension_numbers = #tpu.dot_dimension_numbers<[1], [0], [0], [1], [0, 0, 1, 1], [], []>, precision = #tpu.contract_precision<fp32>} : vector<16x8xf32>, vector<8x8xf32>, vector<16x8xf32> -> vector<16x8xf32>
    %c0_34 = arith.constant 0 : index
    %c0_35 = arith.constant 0 : index
    %69 = vector.load %arg10[%c0_34, %c0_35] : memref<8x8xf32, #tpu.memory_space<vmem>>, vector<8x8xf32>
    %cst_36 = arith.constant dense<0.000000e+00> : vector<16x8xf32>
    %70 = tpu.matmul %42, %69, %cst_36 {dimension_numbers = #tpu.dot_dimension_numbers<[1], [0], [0], [1], [0, 0, 1, 1], [], []>, precision = #tpu.contract_precision<fp32>} : vector<16x8xf32>, vector<8x8xf32>, vector<16x8xf32> -> vector<16x8xf32>
    %c0_37 = arith.constant 0 : index
    %c0_38 = arith.constant 0 : index
    %71 = vector.load %arg11[%c0_37, %c0_38] : memref<1x8xf32, #tpu.memory_space<vmem>>, vector<1x8xf32>
    %72 = vector.broadcast %71 : vector<1x8xf32> to vector<16x8xf32>
    %73 = arith.addf %70, %72 : vector<16x8xf32>
    %74 = arith.addf %68, %73 : vector<16x8xf32>
    %cst_39 = arith.constant 0.000000e+00 : f32
    %75 = vector.broadcast %cst_39 : f32 to vector<16x8xf32>
    %76 = arith.maximumf %74, %75 : vector<16x8xf32>
    %cst_40 = arith.constant dense<0.000000e+00> : vector<8x8xf32>
    %77 = tpu.matmul %0, %76, %cst_40 {dimension_numbers = #tpu.dot_dimension_numbers<[1], [0], [0], [1], [0, 0, 1, 1], [], []>, precision = #tpu.contract_precision<fp32>} : vector<8x16xf32>, vector<16x8xf32>, vector<8x8xf32> -> vector<8x8xf32>
    %78 = vector.extract_strided_slice %77 {offsets = [0, 0], sizes = [4, 8], strides = [1, 1]} : vector<8x8xf32> to vector<4x8xf32>
    %79 = vector.extract_strided_slice %77 {offsets = [4, 0], sizes = [4, 8], strides = [1, 1]} : vector<8x8xf32> to vector<4x8xf32>
    %80 = tpu.concatenate %78, %79 in 1 : vector<4x8xf32>, vector<4x8xf32> -> vector<4x16xf32>
    %c0_41 = arith.constant 0 : index
    %c0_42 = arith.constant 0 : index
    %c0_43 = arith.constant 0 : index
    %81 = vector.load %arg12[%c0_41, %c0_42, %c0_43] : memref<4x16x16xf32, #tpu.memory_space<vmem>>, vector<4x16x16xf32>
    %82 = vector.extract_strided_slice %80 {offsets = [0, 0], sizes = [1, 16], strides = [1, 1]} : vector<4x16xf32> to vector<1x16xf32>
    %83 = vector.extract_strided_slice %81 {offsets = [0, 0, 0], sizes = [1, 16, 16], strides = [1, 1, 1]} : vector<4x16x16xf32> to vector<1x16x16xf32>
    %84 = vector.shape_cast %83 : vector<1x16x16xf32> to vector<16x16xf32>
    %cst_44 = arith.constant dense<0.000000e+00> : vector<1x16xf32>
    %85 = tpu.matmul %82, %84, %cst_44 {dimension_numbers = #tpu.dot_dimension_numbers<[1], [0], [0], [1], [0, 0, 1, 1], [], []>, precision = #tpu.contract_precision<fp32>} : vector<1x16xf32>, vector<16x16xf32>, vector<1x16xf32> -> vector<1x16xf32>
    %86 = vector.extract_strided_slice %80 {offsets = [1, 0], sizes = [1, 16], strides = [1, 1]} : vector<4x16xf32> to vector<1x16xf32>
    %87 = vector.extract_strided_slice %81 {offsets = [1, 0, 0], sizes = [1, 16, 16], strides = [1, 1, 1]} : vector<4x16x16xf32> to vector<1x16x16xf32>
    %88 = vector.shape_cast %87 : vector<1x16x16xf32> to vector<16x16xf32>
    %cst_45 = arith.constant dense<0.000000e+00> : vector<1x16xf32>
    %89 = tpu.matmul %86, %88, %cst_45 {dimension_numbers = #tpu.dot_dimension_numbers<[1], [0], [0], [1], [0, 0, 1, 1], [], []>, precision = #tpu.contract_precision<fp32>} : vector<1x16xf32>, vector<16x16xf32>, vector<1x16xf32> -> vector<1x16xf32>
    %90 = vector.extract_strided_slice %80 {offsets = [2, 0], sizes = [1, 16], strides = [1, 1]} : vector<4x16xf32> to vector<1x16xf32>
    %91 = vector.extract_strided_slice %81 {offsets = [2, 0, 0], sizes = [1, 16, 16], strides = [1, 1, 1]} : vector<4x16x16xf32> to vector<1x16x16xf32>
    %92 = vector.shape_cast %91 : vector<1x16x16xf32> to vector<16x16xf32>
    %cst_46 = arith.constant dense<0.000000e+00> : vector<1x16xf32>
    %93 = tpu.matmul %90, %92, %cst_46 {dimension_numbers = #tpu.dot_dimension_numbers<[1], [0], [0], [1], [0, 0, 1, 1], [], []>, precision = #tpu.contract_precision<fp32>} : vector<1x16xf32>, vector<16x16xf32>, vector<1x16xf32> -> vector<1x16xf32>
    %94 = vector.extract_strided_slice %80 {offsets = [3, 0], sizes = [1, 16], strides = [1, 1]} : vector<4x16xf32> to vector<1x16xf32>
    %95 = vector.extract_strided_slice %81 {offsets = [3, 0, 0], sizes = [1, 16, 16], strides = [1, 1, 1]} : vector<4x16x16xf32> to vector<1x16x16xf32>
    %96 = vector.shape_cast %95 : vector<1x16x16xf32> to vector<16x16xf32>
    %cst_47 = arith.constant dense<0.000000e+00> : vector<1x16xf32>
    %97 = tpu.matmul %94, %96, %cst_47 {dimension_numbers = #tpu.dot_dimension_numbers<[1], [0], [0], [1], [0, 0, 1, 1], [], []>, precision = #tpu.contract_precision<fp32>} : vector<1x16xf32>, vector<16x16xf32>, vector<1x16xf32> -> vector<1x16xf32>
    %98 = tpu.concatenate %85, %89, %93, %97 in 0 : vector<1x16xf32>, vector<1x16xf32>, vector<1x16xf32>, vector<1x16xf32> -> vector<4x16xf32>
    %99 = vector.extract_strided_slice %98 {offsets = [0, 0], sizes = [4, 8], strides = [1, 1]} : vector<4x16xf32> to vector<4x8xf32>
    %100 = vector.extract_strided_slice %98 {offsets = [0, 8], sizes = [4, 8], strides = [1, 1]} : vector<4x16xf32> to vector<4x8xf32>
    %101 = tpu.concatenate %99, %100 in 0 : vector<4x8xf32>, vector<4x8xf32> -> vector<8x8xf32>
    %cst_48 = arith.constant dense<0.000000e+00> : vector<16x8xf32>
    %102 = tpu.matmul %1, %101, %cst_48 {dimension_numbers = #tpu.dot_dimension_numbers<[1], [0], [0], [1], [0, 0, 1, 1], [], []>, precision = #tpu.contract_precision<fp32>} : vector<16x8xf32>, vector<8x8xf32>, vector<16x8xf32> -> vector<16x8xf32>
    %c0_49 = arith.constant 0 : index
    %c0_50 = arith.constant 0 : index
    %103 = vector.load %arg13[%c0_49, %c0_50] : memref<8x8xf32, #tpu.memory_space<vmem>>, vector<8x8xf32>
    %cst_51 = arith.constant dense<0.000000e+00> : vector<16x8xf32>
    %104 = tpu.matmul %76, %103, %cst_51 {dimension_numbers = #tpu.dot_dimension_numbers<[1], [0], [0], [1], [0, 0, 1, 1], [], []>, precision = #tpu.contract_precision<fp32>} : vector<16x8xf32>, vector<8x8xf32>, vector<16x8xf32> -> vector<16x8xf32>
    %c0_52 = arith.constant 0 : index
    %c0_53 = arith.constant 0 : index
    %105 = vector.load %arg14[%c0_52, %c0_53] : memref<1x8xf32, #tpu.memory_space<vmem>>, vector<1x8xf32>
    %106 = vector.broadcast %105 : vector<1x8xf32> to vector<16x8xf32>
    %107 = arith.addf %104, %106 : vector<16x8xf32>
    %108 = arith.addf %102, %107 : vector<16x8xf32>
    %c0_54 = arith.constant 0 : index
    %c0_55 = arith.constant 0 : index
    %109 = vector.load %arg15[%c0_54, %c0_55] : memref<8x128xf32, #tpu.memory_space<vmem>>, vector<8x128xf32>
    %cst_56 = arith.constant dense<0.000000e+00> : vector<16x128xf32>
    %110 = tpu.matmul %108, %109, %cst_56 {dimension_numbers = #tpu.dot_dimension_numbers<[1], [0], [0], [1], [0, 0, 1, 1], [], []>, precision = #tpu.contract_precision<fp32>} : vector<16x8xf32>, vector<8x128xf32>, vector<16x128xf32> -> vector<16x128xf32>
    %c0_57 = arith.constant 0 : index
    %c0_58 = arith.constant 0 : index
    %111 = vector.load %arg16[%c0_57, %c0_58] : memref<1x128xf32, #tpu.memory_space<vmem>>, vector<1x128xf32>
    %112 = vector.broadcast %111 : vector<1x128xf32> to vector<16x128xf32>
    %113 = arith.addf %110, %112 : vector<16x128xf32>
    %cst_59 = arith.constant 0.000000e+00 : f32
    %114 = vector.broadcast %cst_59 : f32 to vector<16x128xf32>
    %115 = arith.maximumf %113, %114 : vector<16x128xf32>
    %c0_60 = arith.constant 0 : index
    %c0_61 = arith.constant 0 : index
    %116 = vector.load %arg17[%c0_60, %c0_61] : memref<128x1xf32, #tpu.memory_space<vmem>>, vector<128x1xf32>
    %cst_62 = arith.constant dense<0.000000e+00> : vector<16x1xf32>
    %117 = tpu.matmul %115, %116, %cst_62 {dimension_numbers = #tpu.dot_dimension_numbers<[1], [0], [0], [1], [0, 0, 1, 1], [], []>, precision = #tpu.contract_precision<fp32>} : vector<16x128xf32>, vector<128x1xf32>, vector<16x1xf32> -> vector<16x1xf32>
    %c0_63 = arith.constant 0 : index
    %c0_64 = arith.constant 0 : index
    %118 = vector.load %arg18[%c0_63, %c0_64] : memref<1x1xf32, #tpu.memory_space<vmem>>, vector<1x1xf32>
    %119 = vector.broadcast %118 : vector<1x1xf32> to vector<16x1xf32>
    %120 = arith.addf %117, %119 : vector<16x1xf32>
    %c0_65 = arith.constant 0 : index
    %c0_66 = arith.constant 0 : index
    %c0_67 = arith.constant 0 : index
    %121 = vector.load %arg19[%c0_65, %c0_66, %c0_67] : memref<1x16x1xf32, #tpu.memory_space<vmem>>, vector<1x16x1xf32>
    %122 = vector.shape_cast %121 : vector<1x16x1xf32> to vector<16x1xf32>
    %123 = vector.shape_cast %120 : vector<16x1xf32> to vector<1x16x1xf32>
    tpu.vector_store %arg19[%c0_65, %c0_66, %c0_67], %123 {strides = array<i32>} : memref<1x16x1xf32, #tpu.memory_space<vmem>>, vector<1x16x1xf32>,
    return
  }
  func.func @transform_0(%arg0: i32) -> (i32, i32, i32) {
    %c0_i32 = arith.constant 0 : i32
    %c0_i32_0 = arith.constant 0 : i32
    %c0_i32_1 = arith.constant 0 : i32
    return %arg0, %c0_i32, %c0_i32_0 : i32, i32, i32
  }
  func.func @transform_1(%arg0: i32) -> (i32, i32) {
    %c0_i32 = arith.constant 0 : i32
    %c0_i32_0 = arith.constant 0 : i32
    %c0_i32_1 = arith.constant 0 : i32
    return %c0_i32, %c0_i32_0 : i32, i32
  }
  func.func @transform_2(%arg0: i32) -> (i32, i32) {
    %c0_i32 = arith.constant 0 : i32
    %c0_i32_0 = arith.constant 0 : i32
    %c0_i32_1 = arith.constant 0 : i32
    return %c0_i32, %c0_i32_0 : i32, i32
  }
  func.func @transform_3(%arg0: i32) -> (i32, i32) {
    %c0_i32 = arith.constant 0 : i32
    %c0_i32_0 = arith.constant 0 : i32
    %c0_i32_1 = arith.constant 0 : i32
    return %c0_i32, %c0_i32_0 : i32, i32
  }
  func.func @transform_4(%arg0: i32) -> (i32, i32) {
    %c0_i32 = arith.constant 0 : i32
    %c0_i32_0 = arith.constant 0 : i32
    %c0_i32_1 = arith.constant 0 : i32
    return %c0_i32, %c0_i32_0 : i32, i32
  }
  func.func @transform_5(%arg0: i32) -> (i32, i32, i32) {
    %c0_i32 = arith.constant 0 : i32
    %c0_i32_0 = arith.constant 0 : i32
    %c0_i32_1 = arith.constant 0 : i32
    %c0_i32_2 = arith.constant 0 : i32
    return %c0_i32, %c0_i32_0, %c0_i32_1 : i32, i32, i32
  }
  func.func @transform_6(%arg0: i32) -> (i32, i32) {
    %c0_i32 = arith.constant 0 : i32
    %c0_i32_0 = arith.constant 0 : i32
    %c0_i32_1 = arith.constant 0 : i32
    return %c0_i32, %c0_i32_0 : i32, i32
  }
  func.func @transform_7(%arg0: i32) -> (i32, i32) {
    %c0_i32 = arith.constant 0 : i32
    %c0_i32_0 = arith.constant 0 : i32
    %c0_i32_1 = arith.constant 0 : i32
    return %c0_i32, %c0_i32_0 : i32, i32
  }
  func.func @transform_8(%arg0: i32) -> (i32, i32, i32) {
    %c0_i32 = arith.constant 0 : i32
    %c0_i32_0 = arith.constant 0 : i32
    %c0_i32_1 = arith.constant 0 : i32
    %c0_i32_2 = arith.constant 0 : i32
    return %c0_i32, %c0_i32_0, %c0_i32_1 : i32, i32, i32
  }
  func.func @transform_9(%arg0: i32) -> (i32, i32) {
    %c0_i32 = arith.constant 0 : i32
    %c0_i32_0 = arith.constant 0 : i32
    %c0_i32_1 = arith.constant 0 : i32
    return %c0_i32, %c0_i32_0 : i32, i32
  }
  func.func @transform_10(%arg0: i32) -> (i32, i32) {
    %c0_i32 = arith.constant 0 : i32
    %c0_i32_0 = arith.constant 0 : i32
    %c0_i32_1 = arith.constant 0 : i32
    return %c0_i32, %c0_i32_0 : i32, i32
  }
  func.func @transform_11(%arg0: i32) -> (i32, i32, i32) {
    %c0_i32 = arith.constant 0 : i32
    %c0_i32_0 = arith.constant 0 : i32
    %c0_i32_1 = arith.constant 0 : i32
    %c0_i32_2 = arith.constant 0 : i32
    return %c0_i32, %c0_i32_0, %c0_i32_1 : i32, i32, i32
  }
  func.func @transform_12(%arg0: i32) -> (i32, i32) {
    %c0_i32 = arith.constant 0 : i32
    %c0_i32_0 = arith.constant 0 : i32
    %c0_i32_1 = arith.constant 0 : i32
    return %c0_i32, %c0_i32_0 : i32, i32
  }
  func.func @transform_13(%arg0: i32) -> (i32, i32) {
    %c0_i32 = arith.constant 0 : i32
    %c0_i32_0 = arith.constant 0 : i32
    %c0_i32_1 = arith.constant 0 : i32
    return %c0_i32, %c0_i32_0 : i32, i32
  }
  func.func @transform_14(%arg0: i32) -> (i32, i32) {
    %c0_i32 = arith.constant 0 : i32
    %c0_i32_0 = arith.constant 0 : i32
    %c0_i32_1 = arith.constant 0 : i32
    return %c0_i32, %c0_i32_0 : i32, i32
  }
  func.func @transform_15(%arg0: i32) -> (i32, i32) {
    %c0_i32 = arith.constant 0 : i32
    %c0_i32_0 = arith.constant 0 : i32
    %c0_i32_1 = arith.constant 0 : i32
    return %c0_i32, %c0_i32_0 : i32, i32
  }
  func.func @transform_16(%arg0: i32) -> (i32, i32) {
    %c0_i32 = arith.constant 0 : i32
    %c0_i32_0 = arith.constant 0 : i32
    %c0_i32_1 = arith.constant 0 : i32
    return %c0_i32, %c0_i32_0 : i32, i32
  }
  func.func @transform_17(%arg0: i32) -> (i32, i32) {
    %c0_i32 = arith.constant 0 : i32
    %c0_i32_0 = arith.constant 0 : i32
    %c0_i32_1 = arith.constant 0 : i32
    return %c0_i32, %c0_i32_0 : i32, i32
  }
  func.func @transform_18(%arg0: i32) -> (i32, i32, i32) {
    %c0_i32 = arith.constant 0 : i32
    %c0_i32_0 = arith.constant 0 : i32
    %c0_i32_1 = arith.constant 0 : i32
    return %arg0, %c0_i32, %c0_i32_0 : i32, i32, i32
  }
}

</mosaic_0001>

<bundles_post_ra>
// kernel: tpu_custom_call.1
= control target key start
LH: loop header
LB: loop body
LE: loop exit
PB: predicated region body
PF: predicated region fallthrough
CT: control target
= control target key end

     0   :  { %s5967_s0 = inlined_call_operand.vmem [shape: f32[2,16,2], index: 0, kind: input, shape index: {}]   ;;  %s5968_s1 = inlined_call_operand.vmem [shape: f32[8,16], index: 1, kind: input, shape index: {}]   ;;  %s5969_s2 = inlined_call_operand.vmem [shape: f32[16,8], index: 2, kind: input, shape index: {}]   ;;  %s5970_s3 = inlined_call_operand.vmem [shape: f32[2,8], index: 3, kind: input, shape index: {}]   ;;  %s5971_s4 = inlined_call_operand.vmem [shape: f32[1,8], index: 4, kind: input, shape index: {}]   ;;  %s5972_s5 = inlined_call_operand.vmem [shape: f32[4,16,16], index: 5, kind: input, shape index: {}]   ;;  %s5973_s6 = inlined_call_operand.vmem [shape: f32[8,8], index: 6, kind: input, shape index: {}]   ;;  %s5974_s7 = inlined_call_operand.vmem [shape: f32[1,8], index: 7, kind: input, shape index: {}]   ;;  %s5975_s8 = inlined_call_operand.vmem [shape: f32[4,16,16], index: 8, kind: input, shape index: {}]   ;;  %s5976_s9 = inlined_call_operand.vmem [shape: f32[8,8], index: 9, kind: input, shape index: {}]   ;;  %s5977_s10 = inlined_call_operand.vmem [shape: f32[1,8], index: 10, kind: input, shape index: {}]   ;;  %s5978_s11 = inlined_call_operand.hbm [shape: f32[4,16,16], index: 11, kind: input, shape index: {}]   ;;  %s5979_s12 = inlined_call_operand.vmem [shape: f32[8,8], index: 12, kind: input, shape index: {}]   ;;  %s5980_s13 = inlined_call_operand.vmem [shape: f32[1,8], index: 13, kind: input, shape index: {}]   ;;  %s5981_s14 = inlined_call_operand.vmem [shape: f32[8,128], index: 14, kind: input, shape index: {}]   ;;  %s5982_s15 = inlined_call_operand.vmem [shape: f32[1,128], index: 15, kind: input, shape index: {}]   ;;  %s5983_s16 = inlined_call_operand.vmem [shape: f32[128,1], index: 16, kind: input, shape index: {}]   ;;  %s5984_s17 = inlined_call_operand.<no memory space> [shape: f32[1,1], index: 17, kind: input, shape index: {}]   ;;  %s5985_s18 = inlined_call_operand.vmem [shape: f32[2,16,1], index: 18, kind: output, shape index: {}]  }
   0x1   :  { %5987 = sst [smem:[#allocation6_spill]] %s5967_s0  ;;  %v23_v0 = vstv %s5984_s17 }
   0x2   :  { %5988 = sst [smem:[#allocation7_spill]] %s5968_s1  ;;  %24 = vst [vmem:[#allocation2] sm:$0x1] %v23_v0 }
   0x3   :  { %5989 = sst [smem:[#allocation8_spill]] %s5969_s2 }
   0x4   :  { %25 = vsyncpa [#allocation4], 0  ;;  %s5264_s29 = smov 0  }
   0x5 LB: > { %s486_s19 = sshll.u32 %s5978_s11, 4  ;;  %s5075_s1 = sadd.s32 4294967295, %s5159_s29   ;;  %s5159_s29 = sphi %s5264_s29, %s31_s29   ;;  %s487_s19 = int_to_ptr.hbm [resolvable:$true] %s486_s19 }
   0x6   : > { %p5077_p0 = scmp.ge.s32.totalorder %s5159_s29, 1  ;;  %p445_p1 = scmp.lt.s32.totalorder %s5159_s29, 3 }
   0x7   : > { %p5098_p2 = scmp.eq.s32.totalorder %s5075_s1, 0  ;;  %s5161_s17 = smov [#allocation3]  }
   0x8   : > { %p446_p3 = pnand %p5077_p0, %p445_p1  ;;  %s488_s20 = sshll.u32 %s5161_s17, 4  ;;  %s489_s20 = int_to_ptr.vmem [resolvable:$true] %s488_s20 }
   0x9   : > { %s5162_s21 = smov 128   ;;  %s5163_s22 = smov 8  }
   0xa   : > { %p5094_p4 = pneg %p446_p3  ;;  %530 = sbr.rel (%p446_p3) target bundleno = 2719 (0xa9f), region = 92 }
   0xc   : > { %p5095_p5 = pnand %p5098_p2, %p5094_p4 }
   0xe   : > { %5097 = dma.hbm_to_vmem [thread:$0]  (!%p5095_p5), %s487_s19, 1024, %s489_s20, [#allocation4], %s5162_s21, %s5162_s21, %s5163_s22  }
   0xf   : > { %5154 = dma.done.wait (%p5098_p2), [#allocation4], 1024  }
  0x10   : > { %5156 = vsyncadd (%p5098_p2), [#allocation4], 4294966272  ;;  %p585_p6 = scmp.lt.s32.totalorder %s5075_s1, 1  ;;  %vm612_vm0 = vcmask 1041408   ;;  %s5990_s25 = sld [smem:[#allocation6_spill]]  ;;  %vm605_vm1 = vcmask 15360  }
  0x11   : > { %v600_v1 = vld [vmem:[%s5970_s3] sm:$0x3]  ;;  %s5991_s20 = sld [smem:[#allocation7_spill]]  ;;  %vm793_vm2 = vcmask 130048   ;;  %s5164_s21 = smov 8   ;;  %vm961_vm3 = vcmask 64512  }
  0x12   : > { %s5994_s1 = smov (!%p585_p6, %s5075_s1), 1  ;;  %v614_v4 = vsel %vm612_vm0, %v600_v1, 0  ;;  %v5113_v24 = vld [vmem:[%s5971_s4] ss:$0 sm:$0xff]  ;;  %vm1628_vm4 = vcmask 1040384   ;;  %vm1631_vm5 = vcmask 1042432  }
  0x13   : > { %s5088_s2 = sshll.u32 %s5994_s1, 4  ;;  %v631_v7 = vand.u32 4294901760, %v614_v4  ;;  %s5165_s28 = smov 120   ;;  %vm1638_vm6 = vcmask 1043456   ;;  %vm5005_vm7 = vcmask 7168  }
  0x14   : > { %s5992_s19 = sld [smem:[#allocation8_spill]]  ;;  %s594_s30 = scalar_lea.vmem %s5985_s18, %s5088_s2 }
  0x15   : > { %632 = vmatpush.msra.mxu2 %v631_v7  ;;  %v666_v11 = vsub.f32 %v614_v4, %v631_v7  ;;  %783 = vmatpush.msra.mxu1 %v631_v7 }
  0x16   : > { %s589_s26 = scalar_lea.vmem %s5990_s25, %s5088_s2 }
  0x17   : > { %v598_v2 = vld [vmem:[%s589_s26] sm:$0xff]  ;;  %v599_v3 = vld [vmem:[%s589_s26 + $0x8] sm:$0xff]  ;;  %v667_v14 = vand.u32 4294901760, %v666_v11  ;;  %697 = vmatpush.msrb.mxu2 %v666_v11 }
  0x18   : > { %v607_v5 = vsel %vm605_vm1, %v598_v2, 0  ;;  %v610_v6 = vsel %vm605_vm1, %v599_v3, 0  ;;  %v595_v28 = vld [vmem:[%s5991_s20] sm:$0xff] }
  0x19   : > { %v633_v8 = vand.u32 4294901760, %v607_v5  ;;  %v641_v9 = vand.u32 4294901760, %v610_v6  ;;  %v668_v16 = vsub.f32 %v666_v11, %v667_v14  ;;  %757 = vmatpush.msra.mxu0 %v667_v14  ;;  %v795_v32 = vsel %vm793_vm2, %v595_v28, 0  ;;  %v963_v14 = vld [vmem:[%s5972_s5] sm:$0xff] }
  0x1a   : > { %v5294_v38 = vand.u32 4294901760, %v795_v32 }
  0x1b   : > { %v634_v10 = vsub.f32 %v607_v5, %v633_v8  ;;  %v642_v12 = vsub.f32 %v610_v6, %v641_v9  ;;  %785 = vmatmul.f32.vlgmr.msra.gmra.mxu1 %v633_v8  ;;  %759 = vmatmul.f32.vlgmr.msra.gmra.mxu0 %v633_v8  ;;  %v669_v19 = vand.u32 4294901760, %v668_v16  ;;  %v990_v16 = vand.u32 4294901760, %v963_v14 }
  0x1c   : > { %v5299_v42 = vsub.f32 %v795_v32, %v5294_v38 }
  0x1d   : > { %v635_v13 = vand.u32 4294901760, %v634_v10  ;;  %v643_v17 = vand.u32 4294901760, %v642_v12  ;;  %670 = vmatpush.msra.mxu3 %v669_v19 }
  0x1e   : > { %672 = vmatmul.f32.vlgmr.msra.gmra.mxu3 %v633_v8  ;;  %v5303_v49 = vand.u32 4294901760, %v5299_v42 }
  0x1f   : > { %v636_v15 = vsub.f32 %v634_v10, %v635_v13  ;;  %v644_v20 = vsub.f32 %v642_v12, %v643_v17  ;;  %725 = vmatpush.msrb.mxu3 %v631_v7 }
  0x20   : > { %v818_v53 = vsub.f32 %v5299_v42, %v5303_v49 }
  0x21   : > { %v637_v18 = vand.u32 4294901760, %v636_v15  ;;  %v645_v21 = vand.u32 4294901760, %v644_v20 }
  0x22   : > { %v5312_v57 = vand.u32 4294901760, %v818_v53  ;;  %v970_v53 = vld [vmem:[%s5972_s5 + $0x38] sm:$0xff] }
  0x23   : > { %638 = vmatmul.f32.vlgmr.msra.gmra.mxu2 %v637_v18  ;;  %789 = vmatmul.f32.gmra.mxu1 %v641_v9  ;;  %v1022_v18 = vsub.f32 %v963_v14, %v990_v16  ;;  %v1640_v14 = vld [vmem:[%s5973_s6] sm:$0xff] }
  0x24   : > { %763 = vmatmul.f32.gmra.mxu0 %v641_v9 }
  0x25   : > { %v1023_v20 = vand.u32 4294901760, %v1022_v18 }
  0x26   : > { %676 = vmatmul.f32.gmra.mxu3 %v641_v9 }
  0x2b   : > { %646 = vmatmul.f32.gmra.mxu2 %v645_v21 }
  0x2e   : > { %729 = vmatmul.f32.vlgmr.msrb.gmra.mxu3 %v635_v13 }
  0x33   : > { %700 = vmatmul.f32.vlgmr.msrb.gmra.mxu2 %v634_v10 }
  0x36   : > { %735 = vmatmul.f32.gmra.mxu3 %v643_v17 }
  0x3b   : > { %705 = vmatmul.f32.gmra.mxu2 %v642_v12  ;;  %v964_v12 = vld [vmem:[%s5972_s5 + $0x8] sm:$0xff] }
  0x3c   : > { %v988_v13 = vand.u32 4294901760, %v964_v12 }
  0x3e   : > { %v1016_v15 = vsub.f32 %v964_v12, %v988_v13 }
  0x40   : > { %v1017_v17 = vand.u32 4294901760, %v1016_v15 }
  0x42   : > { %v1018_v19 = vsub.f32 %v1016_v15, %v1017_v17 }
  0x44   : > { %v1019_v21 = vand.u32 4294901760, %v1018_v19  ;;  %v1666_v19 = vand.u32 4294901760, %v1640_v14 }
  0x98   : > { %v760_v31 = vpop.f32.mrf.mxu0  ;;  %v786_v35 = vpop.f32.mrf.mxu1 }
  0xa0   : > { %v790_v50 = vpop.f32.mrf.mxu1 }
  0xa1   : > { %v673_v23 = vpop.f32.mrf.mxu3  ;;  %v764_v46 = vpop.f32.mrf.mxu0 }
  0xa6   : > { %v639_v22 = vpop.f32.mrf.mxu2 }
  0xa7   : > { %v640_v27 = vadd.f32 %v5113_v24, %v639_v22  ;;  %v1024_v22 = vsub.f32 %v1022_v18, %v1023_v20 }
  0xa9   : > { %v677_v26 = vpop.f32.mrf.mxu3  ;;  %v674_v29 = vadd.f32 %v673_v23, %v640_v27  ;;  %v1025_v23 = vand.u32 4294901760, %v1024_v22 }
  0xae   : > { %v647_v25 = vpop.f32.mrf.mxu2 }
  0xaf   : > { %v648_v36 = vadd.f32 %v5113_v24, %v647_v25  ;;  %v966_v24 = vld [vmem:[%s5972_s5 + $0x18] sm:$0xff] }
  0xb0   : > { %v1150_v25 = vand.u32 4294901760, %v966_v24 }
  0xb1   : > { %v730_v34 = vpop.f32.mrf.mxu3  ;;  %v678_v40 = vadd.f32 %v677_v26, %v648_v36  ;;  %v965_v26 = vld [vmem:[%s5972_s5 + $0x10] sm:$0xff]  ;;  %v968_v36 = vld [vmem:[%s5972_s5 + $0x28] sm:$0xff] }
  0xb2   : > { %v1178_v27 = vsub.f32 %v966_v24, %v1150_v25  ;;  %v1152_v28 = vand.u32 4294901760, %v965_v26  ;;  %v1701_v24 = vsub.f32 %v1640_v14, %v1666_v19 }
  0xb6   : > { %v701_v30 = vpop.f32.mrf.mxu2 }
  0xb7   : > { %v702_v33 = vadd.f32 %v701_v30, %v674_v29  ;;  %v1179_v29 = vand.u32 4294901760, %v1178_v27  ;;  %v1184_v30 = vsub.f32 %v965_v26, %v1152_v28 }
  0xb9   : > { %v731_v37 = vadd.f32 %v730_v34, %v702_v33  ;;  %v736_v45 = vpop.f32.mrf.mxu3  ;;  %v1185_v32 = vand.u32 4294901760, %v1184_v30 }
  0xbb   : > { %v761_v39 = vadd.f32 %v760_v31, %v731_v37  ;;  %v1180_v31 = vsub.f32 %v1178_v27, %v1179_v29  ;;  %v1186_v34 = vsub.f32 %v1184_v30, %v1185_v32  ;;  %v967_v37 = vld [vmem:[%s5972_s5 + $0x20] sm:$0xff] }
  0xbd   : > { %v5296_v41 = vadd.f32 %v786_v35, %v761_v39  ;;  %v1181_v33 = vand.u32 4294901760, %v1180_v31  ;;  %v1187_v35 = vand.u32 4294901760, %v1186_v34  ;;  %v5339_v39 = vand.u32 4294901760, %v968_v36 }
  0xbe   : > { %v706_v43 = vpop.f32.mrf.mxu2 }
  0xbf   : > { %v707_v44 = vadd.f32 %v706_v43, %v678_v40  ;;  %v813_v47 = vand.u32 4294901760, %v5296_v41  ;;  %v5341_v40 = vand.u32 4294901760, %v967_v37  ;;  %v5344_v43 = vsub.f32 %v968_v36, %v5339_v39 }
  0xc1   : > { %v737_v48 = vadd.f32 %v736_v45, %v707_v44  ;;  %v845_v54 = vsub.f32 %v5296_v41, %v813_v47  ;;  %v5347_v45 = vsub.f32 %v967_v37, %v5341_v40  ;;  %v1646_v37 = vsel %vm961_vm3, %v5296_v41, 0 }
  0xc3   : > { %v765_v51 = vadd.f32 %v764_v46, %v737_v48  ;;  %v846_v58 = vand.u32 4294901760, %v845_v54 }
  0xc5   : > { %v5305_v52 = vadd.f32 %v790_v50, %v765_v51  ;;  %v847_v61 = vsub.f32 %v845_v54, %v846_v58  ;;  %v1341_v50 = vand.u32 4294901760, %v5344_v43 }
  0xc7   : > { %v811_v55 = vand.u32 4294901760, %v5305_v52  ;;  %v848_v63 = vand.u32 4294901760, %v847_v61  ;;  %v5363_v61 = vand.u32 4294901760, %v970_v53 }
  0xc9   : > { %v839_v56 = vsub.f32 %v5305_v52, %v811_v55  ;;  %812 = vmatpush.msra.mxu2 %v811_v55  ;;  %948 = vmatpush.msrb.mxu1 %v811_v55 }
  0xcb   : > { %814 = vmatpush.msra.mxu2 %v813_v47  ;;  %950 = vmatpush.msrb.mxu1 %v813_v47  ;;  %v840_v59 = vand.u32 4294901760, %v839_v56 }
  0xcc   : > { %952 = vmatmul.f32.vlgmr.msrb.gmra.mxu1 %v5294_v38  ;;  %820 = vmatmul.f32.vlgmr.msra.gmra.mxu2 %v5312_v57 }
  0xcd   : > { %871 = vmatpush.msrb.mxu2 %v839_v56  ;;  %v841_v60 = vsub.f32 %v839_v56, %v840_v59  ;;  %923 = vmatpush.msrb.mxu0 %v840_v59  ;;  %v969_v59 = vld [vmem:[%s5972_s5 + $0x30] sm:$0xff] }
  0xce   : > { %1073 = vmatpush.msra.mxu1 %v988_v13 }
  0xcf   : > { %874 = vmatpush.msrb.mxu2 %v845_v54  ;;  %v842_v62 = vand.u32 4294901760, %v841_v60  ;;  %927 = vmatpush.msrb.mxu0 %v846_v58  ;;  %v1342_v60 = vsub.f32 %v5344_v43, %v1341_v50 }
  0xd0   : > { %929 = vmatmul.f32.vlgmr.msrb.gmra.mxu0 %v5294_v38  ;;  %1075 = vmatpush.msra.mxu1 %v990_v16 }
  0xd1   : > { %843 = vmatpush.msra.mxu3 %v842_v62  ;;  %989 = vmatpush.msra.mxu2 %v988_v13 }
  0xd2   : > { %1048 = vmatpush.msra.mxu0 %v1016_v15  ;;  %1182 = vmatpush.msrb.mxu1 %v1181_v33 }
  0xd3   : > { %849 = vmatpush.msra.mxu3 %v848_v63  ;;  %991 = vmatpush.msra.mxu2 %v990_v16 }
  0xd4   : > { %851 = vmatmul.f32.vlgmr.msra.gmra.mxu3 %v5294_v38  ;;  %877 = vmatmul.f32.vlgmr.msrb.gmra.mxu2 %v5299_v42 }
  0xd5   : > { %896 = vmatpush.msrb.mxu3 %v811_v55  ;;  %1051 = vmatpush.msra.mxu0 %v1022_v18  ;;  %v1347_v55 = vand.u32 4294901760, %v5347_v45 }
  0xd6   : > { %1100 = vmatpush.msrb.mxu2 %v1017_v17  ;;  %1188 = vmatpush.msrb.mxu1 %v1187_v35 }
  0xd7   : > { %898 = vmatpush.msrb.mxu3 %v813_v47  ;;  %1151 = vmatpush.msrb.mxu0 %v1150_v25 }
  0xd8   : > { %1104 = vmatpush.msrb.mxu2 %v1023_v20 }
  0xd9   : > { %1020 = vmatpush.msra.mxu3 %v1019_v21  ;;  %1153 = vmatpush.msrb.mxu0 %v1152_v28 }
  0xdb   : > { %1026 = vmatpush.msra.mxu3 %v1025_v23 }
  0xdc   : > { %902 = vmatmul.f32.vlgmr.msrb.gmra.mxu3 %v5303_v49 }
  0xdd   : > { %1125 = vmatpush.msrb.mxu3 %v988_v13 }
  0xdf   : > { %1127 = vmatpush.msrb.mxu3 %v990_v16 }
 0x149   : > { %v953_v8 = vpop.f32.mrf.mxu1 }
 0x14d   : > { %v930_v6 = vpop.f32.mrf.mxu0 }
 0x14f   : > { %v821_v0 = vpop.f32.mrf.mxu2 }
 0x157   : > { %v852_v1 = vpop.f32.mrf.mxu3  ;;  %v878_v3 = vpop.f32.mrf.mxu2 }
 0x158   : > { %v853_v2 = vadd.f32 %v852_v1, %v821_v0  ;;  %v1348_v0 = vsub.f32 %v5347_v45, %v1347_v55  ;;  %v5368_v1 = vand.u32 4294901760, %v969_v59 }
 0x15a   : > { %v879_v4 = vadd.f32 %v878_v3, %v853_v2 }
 0x15f   : > { %v903_v5 = vpop.f32.mrf.mxu3 }
 0x160   : > { %v904_v7 = vadd.f32 %v903_v5, %v879_v4  ;;  %v1343_v4 = vand.u32 4294901760, %v1342_v60  ;;  %v5371_v5 = vsub.f32 %v970_v53, %v5363_v61 }
 0x162   : > { %v931_v9 = vadd.f32 %v930_v6, %v904_v7  ;;  %v1503_v13 = vand.u32 4294901760, %v5371_v5 }
 0x164   : > { %v954_v10 = vadd.f32 %v953_v8, %v931_v9  ;;  %v1349_v9 = vand.u32 4294901760, %v1348_v0  ;;  %v1504_v18 = vsub.f32 %v5371_v5, %v1503_v13 }
 0x166   : > { %v957_v11 = vrot.slane %v954_v10, 4  ;;  %v1505_v23 = vand.u32 4294901760, %v1504_v18 }
 0x168   : > { %958 = vrot.lane.b32.xlu0 %v957_v11, %s5164_s21 }
 0x1da   : > { %v959_v44 = vpop.permute.xlu0 %958 }
 0x1db   : > { %v962_v46 = vsel %vm961_vm3, %v954_v10, %v959_v44  ;;  %v5374_v10 = vsub.f32 %v969_v59, %v5368_v1 }
 0x1dc   : > { %v972_v47 = vsel %vm793_vm2, %v962_v46, 0  ;;  %v1133_v48 = vrot.slane %v962_v46, 1  ;;  %v1295_v8 = vrot.slane %v962_v46, 2  ;;  %v1457_v12 = vrot.slane %v962_v46, 3 }
 0x1dd   : > { %v992_v51 = vand.u32 4294901760, %v972_v47  ;;  %v1509_v16 = vand.u32 4294901760, %v5374_v10 }
 0x1de   : > { %v1134_v54 = vsel %vm793_vm2, %v1133_v48, 0  ;;  %v1296_v15 = vsel %vm793_vm2, %v1295_v8, 0  ;;  %v1458_v17 = vsel %vm793_vm2, %v1457_v12, 0 }
 0x1df   : > { %v993_v56 = vsub.f32 %v972_v47, %v992_v51  ;;  %v1154_v58 = vand.u32 4294901760, %v1134_v54  ;;  %1028 = vmatmul.f32.vlgmr.msra.gmra.mxu3 %v992_v51  ;;  %v1316_v20 = vand.u32 4294901760, %v1296_v15  ;;  %v1510_v21 = vsub.f32 %v5374_v10, %v1509_v16 }
 0x1e0   : > { %1235 = vmatpush.msra.mxu3 %v1150_v25  ;;  %v1478_v22 = vand.u32 4294901760, %v1458_v17 }
 0x1e1   : > { %v1155_v62 = vsub.f32 %v1134_v54, %v1154_v58  ;;  %1054 = vmatmul.f32.vlgmr.msra.gmra.mxu0 %v993_v56  ;;  %v994_v63 = vand.u32 4294901760, %v993_v56  ;;  %v1511_v26 = vand.u32 4294901760, %v1510_v21 }
 0x1e2   : > { %1237 = vmatpush.msra.mxu3 %v1152_v28  ;;  %1262 = vmatpush.msra.mxu0 %v1179_v29 }
 0x1e3   : > { %1079 = vmatmul.f32.vlgmr.msra.gmra.mxu1 %v994_v63  ;;  %v995_v2 = vsub.f32 %v993_v56, %v994_v63  ;;  %v1156_v3 = vand.u32 4294901760, %v1155_v62 }
 0x1e4   : > { %1266 = vmatpush.msra.mxu0 %v1185_v32  ;;  %1287 = vmatpush.msra.mxu1 %v1150_v25  ;;  %v1317_v25 = vsub.f32 %v1296_v15, %v1316_v20 }
 0x1e5   : > { %v996_v6 = vand.u32 4294901760, %v995_v2  ;;  %v1157_v7 = vsub.f32 %v1155_v62, %v1156_v3 }
 0x1e6   : > { %1289 = vmatpush.msra.mxu1 %v1152_v28  ;;  %v1702_v28 = vand.u32 4294901760, %v1701_v24  ;;  %v1318_v29 = vand.u32 4294901760, %v1317_v25 }
 0x1e7   : > { %997 = vmatmul.f32.vlgmr.msra.gmra.mxu2 %v996_v6  ;;  %1129 = vmatmul.f32.vlgmr.msrb.gmra.mxu3 %v992_v51  ;;  %v1158_v11 = vand.u32 4294901760, %v1157_v7 }
 0x1e8   : > { %1210 = vmatpush.msra.mxu2 %v1178_v27  ;;  %1344 = vmatpush.msrb.mxu3 %v1343_v4  ;;  %v1479_v27 = vsub.f32 %v1458_v17, %v1478_v22  ;;  %v1703_v31 = vsub.f32 %v1701_v24, %v1702_v28  ;;  %v1319_v32 = vsub.f32 %v1317_v25, %v1318_v29 }
 0x1e9   : > { %1159 = vmatmul.f32.vlgmr.msrb.gmra.mxu0 %v1158_v11 }
 0x1ea   : > { %1213 = vmatpush.msra.mxu2 %v1184_v30  ;;  %1350 = vmatpush.msrb.mxu3 %v1349_v9  ;;  %v1480_v30 = vand.u32 4294901760, %v1479_v27  ;;  %v1704_v34 = vand.u32 4294901760, %v1703_v31  ;;  %v1320_v35 = vand.u32 4294901760, %v1319_v32 }
 0x1eb   : > { %1190 = vmatmul.f32.vlgmr.msrb.gmra.mxu1 %v1154_v58  ;;  %1372 = vmatpush.msrb.mxu0 %v5344_v43  ;;  %v1649_v43 = vsel %vm961_vm3, %v5305_v52, 0 }
 0x1ec   : > { %1397 = vmatpush.msrb.mxu1 %v5339_v39  ;;  %v1481_v33 = vsub.f32 %v1479_v27, %v1480_v30  ;;  %v1676_v44 = vand.u32 4294901760, %v1649_v43 }
 0x1ed   : > { %1375 = vmatpush.msrb.mxu0 %v5347_v45 }
 0x1ee   : > { %1399 = vmatpush.msrb.mxu1 %v5341_v40  ;;  %v1482_v36 = vand.u32 4294901760, %v1481_v33  ;;  %v1677_v46 = vsub.f32 %v1649_v43, %v1676_v44  ;;  %v596_v43 = vld [vmem:[%s5992_s19] sm:$0xff] }
 0x1ef   : > { %1106 = vmatmul.f32.vlgmr.msrb.gmra.mxu2 %v992_v51  ;;  %1241 = vmatmul.f32.vlgmr.msra.gmra.mxu3 %v1156_v3 }
 0x1f0   : > { %1313 = vmatpush.msrb.mxu2 %v5339_v39  ;;  %1449 = vmatpush.msra.mxu3 %v5339_v39  ;;  %v1668_v39 = vand.u32 4294901760, %v1646_v37  ;;  %v1678_v48 = vand.u32 4294901760, %v1677_v46 }
 0x1f1   : > { %1268 = vmatmul.f32.vlgmr.msra.gmra.mxu0 %v1154_v58 }
 0x1f2   : > { %1315 = vmatpush.msrb.mxu2 %v5341_v40  ;;  %1451 = vmatpush.msra.mxu3 %v5341_v40  ;;  %v1669_v40 = vsub.f32 %v1646_v37, %v1668_v39 }
 0x1f3   : > { %1291 = vmatmul.f32.vlgmr.msra.gmra.mxu1 %v1154_v58  ;;  %1475 = vmatpush.msra.mxu0 %v5363_v61 }
 0x1f4   : > { %1506 = vmatpush.msra.mxu1 %v1505_v23  ;;  %v1670_v45 = vand.u32 4294901760, %v1669_v40 }
 0x1f5   : > { %1477 = vmatpush.msra.mxu0 %v5368_v1 }
 0x1f6   : > { %1512 = vmatpush.msra.mxu1 %v1511_v26  ;;  %v1671_v41 = vsub.f32 %v1669_v40, %v1670_v45 }
 0x1f7   : > { %1216 = vmatmul.f32.vlgmr.msra.gmra.mxu2 %v1155_v62  ;;  %1352 = vmatmul.f32.vlgmr.msrb.gmra.mxu3 %v1316_v20 }
 0x1f8   : > { %1424 = vmatpush.msra.mxu2 %v1341_v50  ;;  %1559 = vmatpush.msrb.mxu3 %v5363_v61  ;;  %v1672_v47 = vand.u32 4294901760, %v1671_v41  ;;  %v1679_v50 = vsub.f32 %v1677_v46, %v1678_v48  ;;  %v597_v41 = vld [vmem:[%s5992_s19 + $0x8] sm:$0xff] }
 0x1f9   : > { %1378 = vmatmul.f32.vlgmr.msrb.gmra.mxu0 %v1317_v25 }
 0x1fa   : > { %1428 = vmatpush.msra.mxu2 %v1347_v55  ;;  %1561 = vmatpush.msrb.mxu3 %v5368_v1  ;;  %v1680_v51 = vand.u32 4294901760, %v1679_v50 }
 0x1fb   : > { %1403 = vmatmul.f32.vlgmr.msrb.gmra.mxu1 %v1318_v29  ;;  %1586 = vmatpush.msrb.mxu0 %v1503_v13 }
 0x1fc   : > { %1611 = vmatpush.msrb.mxu1 %v5363_v61 }
 0x1fd   : > { %1590 = vmatpush.msrb.mxu0 %v1509_v16 }
 0x1fe   : > { %1613 = vmatpush.msrb.mxu1 %v5368_v1 }
 0x1ff   : > { %1321 = vmatmul.f32.vlgmr.msrb.gmra.mxu2 %v1320_v35  ;;  %1453 = vmatmul.f32.vlgmr.msra.gmra.mxu3 %v1316_v20 }
 0x200   : > { %1534 = vmatpush.msrb.mxu2 %v5371_v5  ;;  %1705 = vmatpush.msra.mxu3 %v1704_v34 }
 0x201   : > { %1483 = vmatmul.f32.vlgmr.msra.gmra.mxu0 %v1482_v36 }
 0x202   : > { %1537 = vmatpush.msrb.mxu2 %v5374_v10  ;;  %1732 = vmatpush.msra.mxu0 %v1701_v24 }
 0x203   : > { %1514 = vmatmul.f32.vlgmr.msra.gmra.mxu1 %v1478_v22 }
 0x204   : > { %1760 = vmatpush.msra.mxu1 %v1666_v19 }
 0x207   : > { %1430 = vmatmul.f32.vlgmr.msra.gmra.mxu2 %v1316_v20  ;;  %1565 = vmatmul.f32.vlgmr.msrb.gmra.mxu3 %v1480_v30 }
 0x208   : > { %1667 = vmatpush.msra.mxu2 %v1666_v19  ;;  %1818 = vmatpush.msrb.mxu3 %v1666_v19 }
 0x209   : > { %1592 = vmatmul.f32.vlgmr.msrb.gmra.mxu0 %v1478_v22 }
 0x20b   : > { %1615 = vmatmul.f32.vlgmr.msrb.gmra.mxu1 %v1478_v22 }
 0x20f   : > { %1540 = vmatmul.f32.vlgmr.msrb.gmra.mxu2 %v1479_v27  ;;  %1707 = vmatmul.f32.vlgmr.msra.gmra.mxu3 %v1668_v39 }
 0x210   : > { %1792 = vmatpush.msrb.mxu2 %v1702_v28 }
 0x211   : > { %1735 = vmatmul.f32.vlgmr.msra.gmra.mxu0 %v1669_v40 }
 0x213   : > { %1764 = vmatmul.f32.vlgmr.msra.gmra.mxu1 %v1670_v45 }
 0x217   : > { %1673 = vmatmul.f32.vlgmr.msra.gmra.mxu2 %v1672_v47  ;;  %1711 = vmatmul.f32.gmra.mxu3 %v1676_v44  ;;  %v1832_v47 = vsel %vm961_vm3, %v597_v41, 0 }
 0x218   : > { %v5429_v50 = vand.u32 4294901760, %v1832_v47 }
 0x219   : > { %1740 = vmatmul.f32.gmra.mxu0 %v1677_v46 }
 0x21b   : > { %1770 = vmatmul.f32.gmra.mxu1 %v1678_v48 }
 0x21f   : > { %1681 = vmatmul.f32.gmra.mxu2 %v1680_v51  ;;  %1820 = vmatmul.f32.vlgmr.msrb.gmra.mxu3 %v1668_v39 }
 0x227   : > { %1794 = vmatmul.f32.vlgmr.msrb.gmra.mxu2 %v1668_v39  ;;  %1824 = vmatmul.f32.gmra.mxu3 %v1676_v44 }
 0x22f   : > { %1798 = vmatmul.f32.gmra.mxu2 %v1676_v44  ;;  %v1829_v44 = vsel %vm961_vm3, %v596_v43, 0 }
 0x230   : > { %v5417_v45 = vand.u32 4294901760, %v1829_v44 }
 0x232   : > { %v5423_v46 = vsub.f32 %v1829_v44, %v5417_v45 }
 0x234   : > { %v5427_v48 = vand.u32 4294901760, %v5423_v46 }
 0x236   : > { %v1854_v51 = vsub.f32 %v5423_v46, %v5427_v48 }
 0x25e   : > { %v1055_v53 = vpop.f32.mrf.mxu0 }
 0x260   : > { %v1080_v54 = vpop.f32.mrf.mxu1 }
 0x262   : > { %v1029_v52 = vpop.f32.mrf.mxu3 }
 0x266   : > { %v1160_v58 = vpop.f32.mrf.mxu0 }
 0x268   : > { %v1191_v59 = vpop.f32.mrf.mxu1 }
 0x269   : > { %v1192_v5 = vadd.f32 %v1191_v59, %v1160_v58 }
 0x26a   : > { %v998_v55 = vpop.f32.mrf.mxu2  ;;  %v1130_v56 = vpop.f32.mrf.mxu3 }
 0x26b   : > { %v1030_v11 = vadd.f32 %v1029_v52, %v998_v55  ;;  %v5434_v52 = vsub.f32 %v1832_v47, %v5429_v50  ;;  %v5437_v55 = vand.u32 4294901760, %v1854_v51 }
 0x26d   : > { %v1056_v16 = vadd.f32 %v1055_v53, %v1030_v11 }
 0x26e   : > { %v1269_v62 = vpop.f32.mrf.mxu0 }
 0x26f   : > { %v1081_v21 = vadd.f32 %v1080_v54, %v1056_v16 }
 0x270   : > { %v1292_v63 = vpop.f32.mrf.mxu1 }
 0x272   : > { %v1107_v60 = vpop.f32.mrf.mxu2  ;;  %v1242_v61 = vpop.f32.mrf.mxu3 }
 0x273   : > { %v1108_v26 = vadd.f32 %v1107_v60, %v1081_v21 }
 0x275   : > { %v1131_v33 = vadd.f32 %v1130_v56, %v1108_v26  ;;  %v5440_v56 = vand.u32 4294901760, %v5434_v52 }
 0x276   : > { %v1379_v2 = vpop.f32.mrf.mxu0 }
 0x277   : > { %v1862_v60 = vsub.f32 %v5434_v52, %v5440_v56 }
 0x278   : > { %v1404_v4 = vpop.f32.mrf.mxu1 }
 0x27a   : > { %v1217_v0 = vpop.f32.mrf.mxu2  ;;  %v1353_v1 = vpop.f32.mrf.mxu3 }
 0x27b   : > { %v1218_v7 = vadd.f32 %v1217_v0, %v1192_v5  ;;  %v5114_v5 = vld [vmem:[%s5974_s7] ss:$0 sm:$0xff] }
 0x27d   : > { %v1243_v12 = vadd.f32 %v1242_v61, %v1218_v7 }
 0x27e   : > { %v1484_v13 = vpop.f32.mrf.mxu0 }
 0x27f   : > { %v1270_v17 = vadd.f32 %v1269_v62, %v1243_v12 }
 0x280   : > { %v1515_v14 = vpop.f32.mrf.mxu1 }
 0x281   : > { %v1516_v19 = vadd.f32 %v1515_v14, %v1484_v13  ;;  %v1293_v22 = vadd.f32 %v1292_v63, %v1270_v17  ;;  %v5447_v63 = vand.u32 4294901760, %v1862_v60 }
 0x282   : > { %v1322_v3 = vpop.f32.mrf.mxu2  ;;  %v1454_v9 = vpop.f32.mrf.mxu3 }
 0x283   : > { %v1354_v6 = vadd.f32 %v1353_v1, %v1322_v3  ;;  %v1620_v29 = vrot.slane %v1293_v22, 7 }
 0x285   : > { %v1380_v8 = vadd.f32 %v1379_v2, %v1354_v6  ;;  %v1629_v36 = vsel %vm1628_vm4, %v1131_v33, %v1620_v29 }
 0x286   : > { %v1593_v28 = vpop.f32.mrf.mxu0 }
 0x287   : > { %v1405_v15 = vadd.f32 %v1404_v4, %v1380_v8 }
 0x288   : > { %v1616_v31 = vpop.f32.mrf.mxu1 }
 0x28a   : > { %v1431_v10 = vpop.f32.mrf.mxu2  ;;  %v1566_v25 = vpop.f32.mrf.mxu3 }
 0x28b   : > { %v1432_v18 = vadd.f32 %v1431_v10, %v1405_v15 }
 0x28d   : > { %v1455_v24 = vadd.f32 %v1454_v9, %v1432_v18 }
 0x28e   : > { %v1736_v3 = vpop.f32.mrf.mxu0 }
 0x28f   : > { %v1623_v32 = vrot.slane %v1455_v24, 6 }
 0x290   : > { %v1765_v7 = vpop.f32.mrf.mxu1 }
 0x291   : > { %v1630_v37 = vsel %vm612_vm0, %v1629_v36, %v1623_v32 }
 0x292   : > { %v1541_v20 = vpop.f32.mrf.mxu2  ;;  %v1708_v2 = vpop.f32.mrf.mxu3 }
 0x293   : > { %v1542_v23 = vadd.f32 %v1541_v20, %v1516_v19 }
 0x295   : > { %v1567_v27 = vadd.f32 %v1566_v25, %v1542_v23 }
 0x296   : > { %v1741_v9 = vpop.f32.mrf.mxu0 }
 0x297   : > { %v1594_v30 = vadd.f32 %v1593_v28, %v1567_v27 }
 0x298   : > { %v1771_v15 = vpop.f32.mrf.mxu1 }
 0x299   : > { %v1617_v34 = vadd.f32 %v1616_v31, %v1594_v30 }
 0x29a   : > { %v1674_v1 = vpop.f32.mrf.mxu2  ;;  %v1712_v6 = vpop.f32.mrf.mxu3 }
 0x29b   : > { %v1626_v35 = vrot.slane %v1617_v34, 5  ;;  %v1675_v8 = vadd.f32 %v5114_v5, %v1674_v1 }
 0x29d   : > { %v1632_v39 = vsel %vm1631_vm5, %v1630_v37, %v1626_v35  ;;  %v1709_v11 = vadd.f32 %v1708_v2, %v1675_v8 }
 0x29e   : > { %v1634_v40 = vrot.slane %v1632_v39, 4 }
 0x29f   : > { %v1737_v14 = vadd.f32 %v1736_v3, %v1709_v11 }
 0x2a0   : > { %1635 = vrot.lane.b32.xlu0 %v1634_v40, %s5165_s28 }
 0x2a1   : > { %v1766_v18 = vadd.f32 %v1765_v7, %v1737_v14 }
 0x2a2   : > { %v1682_v4 = vpop.f32.mrf.mxu2  ;;  %v1821_v12 = vpop.f32.mrf.mxu3 }
 0x2a3   : > { %v1683_v13 = vadd.f32 %v5114_v5, %v1682_v4 }
 0x2a5   : > { %v1713_v17 = vadd.f32 %v1712_v6, %v1683_v13 }
 0x2a7   : > { %v1742_v22 = vadd.f32 %v1741_v9, %v1713_v17 }
 0x2a9   : > { %v1772_v26 = vadd.f32 %v1771_v15, %v1742_v22  ;;  %v2179_v22 = vld [vmem:[%s5975_s8 + $0x8] sm:$0xff] }
 0x2aa   : > { %v1795_v10 = vpop.f32.mrf.mxu2  ;;  %v1825_v21 = vpop.f32.mrf.mxu3 }
 0x2ab   : > { %v1796_v20 = vadd.f32 %v1795_v10, %v1766_v18 }
 0x2ad   : > { %v1822_v25 = vadd.f32 %v1821_v12, %v1796_v20 }
 0x2b2   : > { %v1799_v19 = vpop.f32.mrf.mxu2 }
 0x2b3   : > { %v1800_v29 = vadd.f32 %v1799_v19, %v1772_v26 }
 0x2b5   : > { %v1826_v33 = vadd.f32 %v1825_v21, %v1800_v29 }
 0x312   : > { %v1636_v53 = vpop.permute.xlu0 %1635 }
 0x313   : > { %v1639_v54 = vsel %vm1638_vm6, %v1632_v39, %v1636_v53 }
 0x314   : > { %v1849_v58 = vand.u32 4294901760, %v1639_v54 }
 0x316   : > { %v1884_v59 = vsub.f32 %v1639_v54, %v1849_v58  ;;  %1850 = vmatpush.msrb.mxu0 %v1849_v58  ;;  %1943 = vmatpush.msra.mxu3 %v1849_v58 }
 0x317   : > { %1856 = vmatmul.f32.vlgmr.msrb.gmra.mxu0 %v5437_v55  ;;  %1947 = vmatmul.f32.vlgmr.msra.gmra.mxu3 %v5427_v48 }
 0x318   : > { %v1885_v61 = vand.u32 4294901760, %v1884_v59  ;;  %1915 = vmatpush.msra.mxu2 %v1884_v59 }
 0x319   : > { %1918 = vmatmul.f32.vlgmr.msra.gmra.mxu2 %v5423_v46 }
 0x31a   : > { %v1886_v62 = vsub.f32 %v1884_v59, %v1885_v61  ;;  %1975 = vmatpush.msra.mxu0 %v1885_v61 }
 0x31c   : > { %v1887_v0 = vand.u32 4294901760, %v1886_v62 }
 0x31e   : > { %1888 = vmatpush.msrb.mxu1 %v1887_v0 }
 0x31f   : > { %1864 = vmatmul.f32.gmra.mxu0 %v5447_v63  ;;  %1890 = vmatmul.f32.vlgmr.msrb.gmra.mxu1 %v5417_v45 }
 0x320   : > { %2001 = vmatpush.msra.mxu1 %v1849_v58  ;;  %1953 = vmatmul.f32.gmra.mxu3 %v5440_v56 }
 0x321   : > { %1923 = vmatmul.f32.gmra.mxu2 %v5434_v52 }
 0x327   : > { %1894 = vmatmul.f32.gmra.mxu1 %v5429_v50  ;;  %1977 = vmatmul.f32.vlgmr.msra.gmra.mxu0 %v5417_v45 }
 0x32f   : > { %1981 = vmatmul.f32.gmra.mxu0 %v5429_v50  ;;  %2003 = vmatmul.f32.vlgmr.msra.gmra.mxu1 %v5417_v45 }
 0x337   : > { %2007 = vmatmul.f32.gmra.mxu1 %v5429_v50 }
 0x394   : > { %v1857_v16 = vpop.f32.mrf.mxu0 }
 0x395   : > { %v1858_v27 = vadd.f32 %v1857_v16, %v1822_v25 }
 0x39a   : > { %v1948_v31 = vpop.f32.mrf.mxu3 }
 0x39c   : > { %v1865_v23 = vpop.f32.mrf.mxu0  ;;  %v1891_v24 = vpop.f32.mrf.mxu1 }
 0x39d   : > { %v1919_v28 = vpop.f32.mrf.mxu2  ;;  %v1892_v30 = vadd.f32 %v1891_v24, %v1858_v27  ;;  %v1866_v36 = vadd.f32 %v1865_v23, %v1826_v33  ;;  %v2203_v23 = vand.u32 4294901760, %v2179_v22  ;;  %v2178_v24 = vld [vmem:[%s5975_s8] sm:$0xff] }
 0x39e   : > { %v2205_v26 = vand.u32 4294901760, %v2178_v24 }
 0x39f   : > { %v1920_v34 = vadd.f32 %v1919_v28, %v1892_v30  ;;  %v2231_v25 = vsub.f32 %v2179_v22, %v2203_v23 }
 0x3a0   : > { %v2237_v28 = vsub.f32 %v2178_v24, %v2205_v26 }
 0x3a1   : > { %v1949_v37 = vadd.f32 %v1948_v31, %v1920_v34  ;;  %v2232_v27 = vand.u32 4294901760, %v2231_v25  ;;  %v2181_v34 = vld [vmem:[%s5975_s8 + $0x18] sm:$0xff] }
 0x3a2   : > { %v2238_v30 = vand.u32 4294901760, %v2237_v28 }
 0x3a3   : > { %v1954_v51 = vpop.f32.mrf.mxu3  ;;  %v2233_v29 = vsub.f32 %v2231_v25, %v2232_v27 }
 0x3a4   : > { %v1895_v32 = vpop.f32.mrf.mxu1  ;;  %v1978_v35 = vpop.f32.mrf.mxu0 }
 0x3a5   : > { %v1896_v39 = vadd.f32 %v1895_v32, %v1866_v36  ;;  %v1924_v40 = vpop.f32.mrf.mxu2  ;;  %v1979_v43 = vadd.f32 %v1978_v35, %v1949_v37  ;;  %v2234_v31 = vand.u32 4294901760, %v2233_v29  ;;  %v2239_v32 = vsub.f32 %v2237_v28, %v2238_v30  ;;  %v2180_v36 = vld [vmem:[%s5975_s8 + $0x10] sm:$0xff] }
 0x3a6   : > { %v2365_v35 = vand.u32 4294901760, %v2181_v34 }
 0x3a7   : > { %v1925_v41 = vadd.f32 %v1924_v40, %v1896_v39  ;;  %v2240_v33 = vand.u32 4294901760, %v2239_v32  ;;  %v2367_v39 = vand.u32 4294901760, %v2180_v36  ;;  %v2852_v32 = vld [vmem:[%s5976_s9] sm:$0xff] }
 0x3a8   : > { %v2393_v37 = vsub.f32 %v2181_v34, %v2365_v35 }
 0x3a9   : > { %v1955_v58 = vadd.f32 %v1954_v51, %v1925_v41 }
 0x3aa   : > { %v2394_v40 = vand.u32 4294901760, %v2393_v37 }
 0x3ac   : > { %v2004_v44 = vpop.f32.mrf.mxu1  ;;  %v1982_v54 = vpop.f32.mrf.mxu0 }
 0x3ad   : > { %v2005_v47 = vadd.f32 %v2004_v44, %v1979_v43  ;;  %v1983_v59 = vadd.f32 %v1982_v54, %v1955_v58  ;;  %v2399_v43 = vsub.f32 %v2180_v36, %v2367_v39  ;;  %v2395_v44 = vsub.f32 %v2393_v37, %v2394_v40  ;;  %v2183_v58 = vld [vmem:[%s5975_s8 + $0x28] sm:$0xff] }
 0x3af   : > { %v5461_v53 = vmax.f32 %v2005_v47, 0.0  ;;  %v2400_v41 = vand.u32 4294901760, %v2399_v43  ;;  %v2396_v47 = vand.u32 4294901760, %v2395_v44 }
 0x3b1   : > { %v2029_v60 = vand.u32 4294901760, %v5461_v53  ;;  %v2401_v51 = vsub.f32 %v2399_v43, %v2400_v41 }
 0x3b3   : > { %v2061_v1 = vsub.f32 %v5461_v53, %v2029_v60  ;;  %v2402_v54 = vand.u32 4294901760, %v2401_v51 }
 0x3b4   : > { %v2008_v61 = vpop.f32.mrf.mxu1 }
 0x3b5   : > { %v2009_v62 = vadd.f32 %v2008_v61, %v1983_v59  ;;  %v2062_v4 = vand.u32 4294901760, %v2061_v1  ;;  %v2182_v59 = vld [vmem:[%s5975_s8 + $0x20] sm:$0xff] }
 0x3b6   : > { %v5496_v61 = vand.u32 4294901760, %v2182_v59 }
 0x3b7   : > { %v5464_v0 = vmax.f32 %v2009_v62, 0.0  ;;  %v2063_v7 = vsub.f32 %v2061_v1, %v2062_v4 }
 0x3b9   : > { %v2027_v2 = vand.u32 4294901760, %v5464_v0  ;;  %v2064_v9 = vand.u32 4294901760, %v2063_v7 }
 0x3bb   : > { %v2055_v3 = vsub.f32 %v5464_v0, %v2027_v2  ;;  %2028 = vmatpush.msrb.mxu2 %v2027_v2  ;;  %2112 = vmatpush.msrb.mxu1 %v2027_v2 }
 0x3bd   : > { %2030 = vmatpush.msrb.mxu2 %v2029_v60  ;;  %2087 = vmatpush.msrb.mxu0 %v2055_v3  ;;  %v2056_v5 = vand.u32 4294901760, %v2055_v3 }
 0x3be   : > { %2114 = vmatpush.msrb.mxu1 %v2029_v60  ;;  %2036 = vmatmul.f32.vlgmr.msrb.gmra.mxu2 %v5312_v57 }
 0x3bf   : > { %2090 = vmatpush.msrb.mxu0 %v2061_v1  ;;  %2139 = vmatpush.msra.mxu2 %v2056_v5  ;;  %v2057_v6 = vsub.f32 %v2055_v3, %v2056_v5 }
 0x3c0   : > { %2093 = vmatmul.f32.vlgmr.msrb.gmra.mxu0 %v5299_v42  ;;  %2118 = vmatmul.f32.vlgmr.msrb.gmra.mxu1 %v5303_v49 }
 0x3c1   : > { %2143 = vmatpush.msra.mxu2 %v2062_v4  ;;  %v2058_v8 = vand.u32 4294901760, %v2057_v6  ;;  %2204 = vmatpush.msra.mxu0 %v2203_v23 }
 0x3c2   : > { %2235 = vmatpush.msra.mxu1 %v2234_v31 }
 0x3c3   : > { %2059 = vmatpush.msrb.mxu3 %v2058_v8  ;;  %2263 = vmatpush.msrb.mxu2 %v2231_v25  ;;  %v2185_v8 = vld [vmem:[%s5975_s8 + $0x38] sm:$0xff] }
 0x3c4   : > { %2206 = vmatpush.msra.mxu0 %v2205_v26  ;;  %2241 = vmatpush.msra.mxu1 %v2240_v33 }
 0x3c5   : > { %2065 = vmatpush.msrb.mxu3 %v2064_v9  ;;  %2266 = vmatpush.msrb.mxu2 %v2237_v28 }
 0x3c6   : > { %2067 = vmatmul.f32.vlgmr.msrb.gmra.mxu3 %v5294_v38  ;;  %2145 = vmatmul.f32.vlgmr.msra.gmra.mxu2 %v5294_v38 }
 0x3c7   : > { %2164 = vmatpush.msra.mxu3 %v2027_v2  ;;  %2315 = vmatpush.msrb.mxu0 %v2232_v27  ;;  %v5502_v2 = vsub.f32 %v2182_v59, %v5496_v61 }
 0x3c8   : > { %2340 = vmatpush.msrb.mxu1 %v2203_v23  ;;  %2366 = vmatpush.msra.mxu2 %v2365_v35 }
 0x3c9   : > { %2166 = vmatpush.msra.mxu3 %v2029_v60  ;;  %2319 = vmatpush.msrb.mxu0 %v2238_v30  ;;  %v5494_v60 = vand.u32 4294901760, %v2183_v58 }
 0x3ca   : > { %2342 = vmatpush.msrb.mxu1 %v2205_v26  ;;  %2368 = vmatpush.msra.mxu2 %v2367_v39 }
 0x3cb   : > { %2288 = vmatpush.msrb.mxu3 %v2203_v23  ;;  %v5499_v62 = vsub.f32 %v2183_v58, %v5494_v60 }
 0x3cd   : > { %2290 = vmatpush.msrb.mxu3 %v2205_v26  ;;  %v2556_v6 = vand.u32 4294901760, %v5499_v62 }
 0x3ce   : > { %2168 = vmatmul.f32.vlgmr.msra.gmra.mxu3 %v5294_v38 }
 0x3cf   : > { %2397 = vmatpush.msra.mxu3 %v2396_v47 }
 0x3d1   : > { %2403 = vmatpush.msra.mxu3 %v2402_v54 }
 0x43d   : > { %v2094_v12 = vpop.f32.mrf.mxu0  ;;  %v2119_v14 = vpop.f32.mrf.mxu1 }
 0x441   : > { %v2037_v10 = vpop.f32.mrf.mxu2 }
 0x449   : > { %v2068_v11 = vpop.f32.mrf.mxu3  ;;  %v2146_v16 = vpop.f32.mrf.mxu2 }
 0x44a   : > { %v2069_v13 = vadd.f32 %v2068_v11, %v2037_v10  ;;  %v2562_v10 = vand.u32 4294901760, %v5502_v2 }
 0x44c   : > { %v2095_v15 = vadd.f32 %v2094_v12, %v2069_v13  ;;  %v2184_v13 = vld [vmem:[%s5975_s8 + $0x30] sm:$0xff] }
 0x44e   : > { %v2120_v17 = vadd.f32 %v2119_v14, %v2095_v15  ;;  %v2557_v14 = vsub.f32 %v5499_v62, %v2556_v6  ;;  %v5518_v15 = vand.u32 4294901760, %v2185_v8 }
 0x450   : > { %v2147_v18 = vadd.f32 %v2146_v16, %v2120_v17  ;;  %v2558_v22 = vand.u32 4294901760, %v2557_v14  ;;  %v5529_v23 = vsub.f32 %v2185_v8, %v5518_v15  ;;  %v2861_v8 = vsel %vm961_vm3, %v5464_v0, 0 }
 0x451   : > { %v2169_v19 = vpop.f32.mrf.mxu3 }
 0x452   : > { %v2170_v20 = vadd.f32 %v2169_v19, %v2147_v18  ;;  %v2563_v18 = vsub.f32 %v5502_v2, %v2562_v10  ;;  %v5525_v19 = vand.u32 4294901760, %v2184_v13  ;;  %v2718_v31 = vand.u32 4294901760, %v5529_v23 }
 0x454   : > { %v2173_v21 = vrot.slane %v2170_v20, 4  ;;  %v2564_v27 = vand.u32 4294901760, %v2563_v18  ;;  %v5533_v28 = vsub.f32 %v2184_v13, %v5525_v19  ;;  %v2719_v36 = vsub.f32 %v5529_v23, %v2718_v31 }
 0x456   : > { %2174 = vrot.lane.b32.xlu1 %v2173_v21, %s5164_s21  ;;  %v2724_v34 = vand.u32 4294901760, %v5533_v28  ;;  %v2720_v44 = vand.u32 4294901760, %v2719_v36 }
 0x4c8   : > { %v2175_v1 = vpop.permute.xlu1 %2174 }
 0x4c9   : > { %v2177_v3 = vsel %vm961_vm3, %v2170_v20, %v2175_v1 }
 0x4ca   : > { %v2187_v4 = vsel %vm793_vm2, %v2177_v3, 0  ;;  %v2348_v5 = vrot.slane %v2177_v3, 1  ;;  %v2510_v26 = vrot.slane %v2177_v3, 2  ;;  %v2672_v30 = vrot.slane %v2177_v3, 3 }
 0x4cb   : > { %v2207_v7 = vand.u32 4294901760, %v2187_v4 }
 0x4cc   : > { %v2349_v9 = vsel %vm793_vm2, %v2348_v5, 0  ;;  %v2511_v33 = vsel %vm793_vm2, %v2510_v26, 0 }
 0x4cd   : > { %v2208_v11 = vsub.f32 %v2187_v4, %v2207_v7  ;;  %v2369_v12 = vand.u32 4294901760, %v2349_v9  ;;  %2243 = vmatmul.f32.vlgmr.msra.gmra.mxu1 %v2207_v7 }
 0x4ce   : > { %2450 = vmatpush.msra.mxu1 %v2365_v35 }
 0x4cf   : > { %v5520_v16 = vsub.f32 %v2349_v9, %v2369_v12  ;;  %2269 = vmatmul.f32.vlgmr.msrb.gmra.mxu2 %v2208_v11  ;;  %v2209_v17 = vand.u32 4294901760, %v2208_v11 }
 0x4d0   : > { %2452 = vmatpush.msra.mxu1 %v2367_v39  ;;  %2477 = vmatpush.msrb.mxu2 %v2394_v40  ;;  %v2725_v40 = vsub.f32 %v5533_v28, %v2724_v34 }
 0x4d1   : > { %2294 = vmatmul.f32.vlgmr.msrb.gmra.mxu3 %v2209_v17  ;;  %v2210_v20 = vsub.f32 %v2208_v11, %v2209_v17  ;;  %v2371_v21 = vand.u32 4294901760, %v5520_v16 }
 0x4d2   : > { %2481 = vmatpush.msrb.mxu2 %v2400_v41  ;;  %2502 = vmatpush.msrb.mxu3 %v2365_v35  ;;  %v2673_v35 = vsel %vm793_vm2, %v2672_v30, 0  ;;  %v2726_v51 = vand.u32 4294901760, %v2725_v40 }
 0x4d3   : > { %v2211_v24 = vand.u32 4294901760, %v2210_v20  ;;  %v2372_v25 = vsub.f32 %v5520_v16, %v2371_v21 }
 0x4d4   : > { %2504 = vmatpush.msrb.mxu3 %v2367_v39  ;;  %v2531_v39 = vand.u32 4294901760, %v2511_v33 }
 0x4d5   : > { %2212 = vmatmul.f32.vlgmr.msra.gmra.mxu0 %v2211_v24  ;;  %2344 = vmatmul.f32.vlgmr.msrb.gmra.mxu1 %v2207_v7  ;;  %v2373_v29 = vand.u32 4294901760, %v2372_v25 }
 0x4d6   : > { %2425 = vmatpush.msra.mxu0 %v2393_v37  ;;  %2559 = vmatpush.msrb.mxu1 %v2558_v22  ;;  %v2878_v37 = vand.u32 4294901760, %v2852_v32  ;;  %v2532_v47 = vsub.f32 %v2511_v33, %v2531_v39 }
 0x4d7   : > { %2374 = vmatmul.f32.vlgmr.msra.gmra.mxu2 %v2373_v29 }
 0x4d8   : > { %2428 = vmatpush.msra.mxu0 %v2399_v43  ;;  %2565 = vmatpush.msrb.mxu1 %v2564_v27  ;;  %v2693_v43 = vand.u32 4294901760, %v2673_v35  ;;  %v2913_v41 = vsub.f32 %v2852_v32, %v2878_v37  ;;  %v2533_v59 = vand.u32 4294901760, %v2532_v47 }
 0x4d9   : > { %2405 = vmatmul.f32.vlgmr.msra.gmra.mxu3 %v2369_v12  ;;  %2587 = vmatpush.msra.mxu2 %v5499_v62 }
 0x4da   : > { %2612 = vmatpush.msra.mxu3 %v5494_v60  ;;  %v2694_v54 = vsub.f32 %v2673_v35, %v2693_v43  ;;  %v2914_v58 = vand.u32 4294901760, %v2913_v41  ;;  %v2534_v1 = vsub.f32 %v2532_v47, %v2533_v59 }
 0x4db   : > { %2590 = vmatpush.msra.mxu2 %v5502_v2  ;;  %v2858_v2 = vsel %vm961_vm3, %v5461_v53, 0 }
 0x4dc   : > { %2614 = vmatpush.msra.mxu3 %v5496_v61  ;;  %v2535_v5 = vand.u32 4294901760, %v2534_v1 }
 0x4dd   : > { %2321 = vmatmul.f32.vlgmr.msrb.gmra.mxu0 %v2207_v7  ;;  %2456 = vmatmul.f32.vlgmr.msra.gmra.mxu1 %v2371_v21 }
 0x4de   : > { %2528 = vmatpush.msrb.mxu0 %v5494_v60  ;;  %2664 = vmatpush.msra.mxu1 %v5494_v60  ;;  %v2695_v60 = vand.u32 4294901760, %v2694_v54 }
 0x4df   : > { %2483 = vmatmul.f32.vlgmr.msrb.gmra.mxu2 %v2369_v12 }
 0x4e0   : > { %2530 = vmatpush.msrb.mxu0 %v5496_v61  ;;  %2666 = vmatpush.msra.mxu1 %v5496_v61  ;;  %v2915_v61 = vsub.f32 %v2913_v41, %v2914_v58  ;;  %v2696_v3 = vsub.f32 %v2694_v54, %v2695_v60 }
 0x4e1   : > { %2506 = vmatmul.f32.vlgmr.msrb.gmra.mxu3 %v2369_v12  ;;  %2690 = vmatpush.msrb.mxu2 %v5518_v15 }
 0x4e2   : > { %2721 = vmatpush.msrb.mxu3 %v2720_v44  ;;  %v2916_v4 = vand.u32 4294901760, %v2915_v61  ;;  %v2697_v62 = vand.u32 4294901760, %v2696_v3 }
 0x4e3   : > { %2692 = vmatpush.msrb.mxu2 %v5525_v19 }
 0x4e4   : > { %2727 = vmatpush.msrb.mxu3 %v2726_v51 }
 0x4e5   : > { %2431 = vmatmul.f32.vlgmr.msra.gmra.mxu0 %v5520_v16  ;;  %2567 = vmatmul.f32.vlgmr.msrb.gmra.mxu1 %v2531_v39 }
 0x4e6   : > { %2639 = vmatpush.msra.mxu0 %v2556_v6  ;;  %2774 = vmatpush.msrb.mxu1 %v5518_v15  ;;  %v2880_v6 = vand.u32 4294901760, %v2858_v2 }
 0x4e7   : > { %2593 = vmatmul.f32.vlgmr.msra.gmra.mxu2 %v2532_v47 }
 0x4e8   : > { %2643 = vmatpush.msra.mxu0 %v2562_v10  ;;  %2776 = vmatpush.msrb.mxu1 %v5525_v19  ;;  %v2881_v7 = vsub.f32 %v2858_v2, %v2880_v6  ;;  %v2888_v10 = vand.u32 4294901760, %v2861_v8 }
 0x4e9   : > { %2618 = vmatmul.f32.vlgmr.msra.gmra.mxu3 %v2533_v59  ;;  %2801 = vmatpush.msra.mxu2 %v2718_v31 }
 0x4ea   : > { %2826 = vmatpush.msra.mxu3 %v5518_v15  ;;  %v2882_v9 = vand.u32 4294901760, %v2881_v7  ;;  %v2889_v11 = vsub.f32 %v2861_v8, %v2888_v10 }
 0x4eb   : > { %2805 = vmatpush.msra.mxu2 %v2724_v34 }
 0x4ec   : > { %2828 = vmatpush.msra.mxu3 %v5525_v19  ;;  %v2883_v53 = vsub.f32 %v2881_v7, %v2882_v9  ;;  %v2890_v13 = vand.u32 4294901760, %v2889_v11 }
 0x4ed   : > { %2536 = vmatmul.f32.vlgmr.msrb.gmra.mxu0 %v2535_v5  ;;  %2668 = vmatmul.f32.vlgmr.msra.gmra.mxu1 %v2531_v39 }
 0x4ee   : > { %2749 = vmatpush.msrb.mxu0 %v5529_v23  ;;  %2917 = vmatpush.msra.mxu1 %v2916_v4  ;;  %v2884_v12 = vand.u32 4294901760, %v2883_v53  ;;  %v2891_v14 = vsub.f32 %v2889_v11, %v2890_v13 }
 0x4ef   : > { %2698 = vmatmul.f32.vlgmr.msrb.gmra.mxu2 %v2697_v62 }
 0x4f0   : > { %2752 = vmatpush.msrb.mxu0 %v5533_v28  ;;  %2944 = vmatpush.msrb.mxu2 %v2913_v41  ;;  %v2892_v15 = vand.u32 4294901760, %v2891_v14 }
 0x4f1   : > { %2729 = vmatmul.f32.vlgmr.msrb.gmra.mxu3 %v2693_v43 }
 0x4f2   : > { %2972 = vmatpush.msrb.mxu3 %v2878_v37 }
 0x4f5   : > { %2645 = vmatmul.f32.vlgmr.msra.gmra.mxu0 %v2531_v39  ;;  %2780 = vmatmul.f32.vlgmr.msrb.gmra.mxu1 %v2695_v60 }
 0x4f6   : > { %2879 = vmatpush.msra.mxu0 %v2878_v37  ;;  %3030 = vmatpush.msrb.mxu1 %v2878_v37 }
 0x4f7   : > { %2807 = vmatmul.f32.vlgmr.msra.gmra.mxu2 %v2693_v43 }
 0x4f9   : > { %2830 = vmatmul.f32.vlgmr.msra.gmra.mxu3 %v2693_v43 }
 0x4fd   : > { %2755 = vmatmul.f32.vlgmr.msrb.gmra.mxu0 %v2694_v54  ;;  %2919 = vmatmul.f32.vlgmr.msra.gmra.mxu1 %v2880_v6 }
 0x4fe   : > { %3004 = vmatpush.msrb.mxu0 %v2914_v58 }
 0x4ff   : > { %2947 = vmatmul.f32.vlgmr.msrb.gmra.mxu2 %v2881_v7 }
 0x501   : > { %2976 = vmatmul.f32.vlgmr.msrb.gmra.mxu3 %v2882_v9 }
 0x505   : > { %2885 = vmatmul.f32.vlgmr.msra.gmra.mxu0 %v2884_v12  ;;  %2923 = vmatmul.f32.gmra.mxu1 %v2888_v10 }
 0x507   : > { %2952 = vmatmul.f32.gmra.mxu2 %v2889_v11 }
 0x509   : > { %2982 = vmatmul.f32.gmra.mxu3 %v2890_v13 }
 0x50d   : > { %2893 = vmatmul.f32.gmra.mxu0 %v2892_v15  ;;  %3032 = vmatmul.f32.vlgmr.msrb.gmra.mxu1 %v2880_v6 }
 0x515   : > { %3006 = vmatmul.f32.vlgmr.msrb.gmra.mxu0 %v2880_v6  ;;  %3036 = vmatmul.f32.gmra.mxu1 %v2888_v10 }
 0x51d   : > { %3010 = vmatmul.f32.gmra.mxu0 %v2888_v10 }
 0x54a   : > { %v2244_v0 = vpop.f32.mrf.mxu1 }
 0x552   : > { %v2213_v16 = vpop.f32.mrf.mxu0  ;;  %v2270_v17 = vpop.f32.mrf.mxu2 }
 0x553   : > { %v2345_v18 = vpop.f32.mrf.mxu1  ;;  %v2245_v37 = vadd.f32 %v2244_v0, %v2213_v16 }
 0x554   : > { %v2295_v19 = vpop.f32.mrf.mxu3 }
 0x555   : > { %v2271_v41 = vadd.f32 %v2270_v17, %v2245_v37 }
 0x557   : > { %v2296_v59 = vadd.f32 %v2295_v19, %v2271_v41 }
 0x55a   : > { %v2322_v20 = vpop.f32.mrf.mxu0  ;;  %v2375_v21 = vpop.f32.mrf.mxu2 }
 0x55b   : > { %v2457_v23 = vpop.f32.mrf.mxu1  ;;  %v2323_v4 = vadd.f32 %v2322_v20, %v2296_v59 }
 0x55c   : > { %v2406_v22 = vpop.f32.mrf.mxu3 }
 0x55d   : > { %v2407_v31 = vadd.f32 %v2406_v22, %v2375_v21  ;;  %v2346_v9 = vadd.f32 %v2345_v18, %v2323_v4 }
 0x562   : > { %v2432_v24 = vpop.f32.mrf.mxu0  ;;  %v2484_v25 = vpop.f32.mrf.mxu2 }
 0x563   : > { %v2568_v27 = vpop.f32.mrf.mxu1  ;;  %v2433_v33 = vadd.f32 %v2432_v24, %v2407_v31 }
 0x564   : > { %v2507_v26 = vpop.f32.mrf.mxu3 }
 0x565   : > { %v2458_v39 = vadd.f32 %v2457_v23, %v2433_v33 }
 0x567   : > { %v2485_v47 = vadd.f32 %v2484_v25, %v2458_v39  ;;  %v5115_v25 = vld [vmem:[%s5977_s10] ss:$0 sm:$0xff] }
 0x569   : > { %v2508_v60 = vadd.f32 %v2507_v26, %v2485_v47 }
 0x56a   : > { %v2537_v28 = vpop.f32.mrf.mxu0  ;;  %v2594_v29 = vpop.f32.mrf.mxu2 }
 0x56b   : > { %v2569_v32 = vadd.f32 %v2568_v27, %v2537_v28  ;;  %v2669_v35 = vpop.f32.mrf.mxu1  ;;  %v2835_v2 = vrot.slane %v2508_v60, 7 }
 0x56c   : > { %v2619_v30 = vpop.f32.mrf.mxu3 }
 0x56d   : > { %v2595_v34 = vadd.f32 %v2594_v29, %v2569_v32  ;;  %v2843_v53 = vsel %vm1628_vm4, %v2346_v9, %v2835_v2 }
 0x56f   : > { %v2620_v43 = vadd.f32 %v2619_v30, %v2595_v34 }
 0x572   : > { %v2646_v36 = vpop.f32.mrf.mxu0  ;;  %v2699_v40 = vpop.f32.mrf.mxu2 }
 0x573   : > { %v2647_v51 = vadd.f32 %v2646_v36, %v2620_v43  ;;  %v2781_v3 = vpop.f32.mrf.mxu1 }
 0x574   : > { %v2730_v44 = vpop.f32.mrf.mxu3 }
 0x575   : > { %v2731_v54 = vadd.f32 %v2730_v44, %v2699_v40  ;;  %v2670_v1 = vadd.f32 %v2669_v35, %v2647_v51 }
 0x577   : > { %v2838_v7 = vrot.slane %v2670_v1, 6 }
 0x579   : > { %v2844_v12 = vsel %vm612_vm0, %v2843_v53, %v2838_v7 }
 0x57a   : > { %v2756_v58 = vpop.f32.mrf.mxu0  ;;  %v2808_v62 = vpop.f32.mrf.mxu2 }
 0x57b   : > { %v2757_v61 = vadd.f32 %v2756_v58, %v2731_v54  ;;  %v2920_v22 = vpop.f32.mrf.mxu1 }
 0x57c   : > { %v2831_v8 = vpop.f32.mrf.mxu3 }
 0x57d   : > { %v2782_v5 = vadd.f32 %v2781_v3, %v2757_v61 }
 0x57f   : > { %v2809_v6 = vadd.f32 %v2808_v62, %v2782_v5 }
 0x581   : > { %v2832_v10 = vadd.f32 %v2831_v8, %v2809_v6 }
 0x582   : > { %v2886_v21 = vpop.f32.mrf.mxu0  ;;  %v2948_v23 = vpop.f32.mrf.mxu2 }
 0x583   : > { %v2841_v11 = vrot.slane %v2832_v10, 5  ;;  %v2924_v26 = vpop.f32.mrf.mxu1  ;;  %v2887_v28 = vadd.f32 %v5115_v25, %v2886_v21 }
 0x584   : > { %v2977_v27 = vpop.f32.mrf.mxu3 }
 0x585   : > { %v2845_v13 = vsel %vm1631_vm5, %v2844_v12, %v2841_v11  ;;  %v2921_v31 = vadd.f32 %v2920_v22, %v2887_v28 }
 0x586   : > { %v2847_v14 = vrot.slane %v2845_v13, 4 }
 0x587   : > { %v2949_v33 = vadd.f32 %v2948_v23, %v2921_v31 }
 0x588   : > { %2848 = vrot.lane.b32.xlu1 %v2847_v14, %s5165_s28 }
 0x589   : > { %v2978_v37 = vadd.f32 %v2977_v27, %v2949_v33 }
 0x58a   : > { %v2894_v24 = vpop.f32.mrf.mxu0  ;;  %v2953_v29 = vpop.f32.mrf.mxu2 }
 0x58b   : > { %v3033_v32 = vpop.f32.mrf.mxu1  ;;  %v2895_v34 = vadd.f32 %v5115_v25, %v2894_v24 }
 0x58c   : > { %v2983_v35 = vpop.f32.mrf.mxu3 }
 0x58d   : > { %v2925_v39 = vadd.f32 %v2924_v26, %v2895_v34 }
 0x58f   : > { %v2954_v44 = vadd.f32 %v2953_v29, %v2925_v39 }
 0x591   : > { %v2984_v58 = vadd.f32 %v2983_v35, %v2954_v44  ;;  %v3384_v44 = vld [vmem:[#allocation3] sm:$0xff] }
 0x592   : > { %v3007_v30 = vpop.f32.mrf.mxu0 }
 0x593   : > { %v3008_v43 = vadd.f32 %v3007_v30, %v2978_v37  ;;  %v3037_v41 = vpop.f32.mrf.mxu1 }
 0x595   : > { %v3034_v54 = vadd.f32 %v3033_v32, %v3008_v43 }
 0x59a   : > { %v3011_v40 = vpop.f32.mrf.mxu0 }
 0x59b   : > { %v3012_v61 = vadd.f32 %v3011_v40, %v2984_v58  ;;  %v3385_v40 = vld [vmem:[#allocation3 + $0x8] sm:$0xff] }
 0x59c   : > { %v3409_v43 = vand.u32 4294901760, %v3385_v40 }
 0x59d   : > { %v3038_v5 = vadd.f32 %v3037_v41, %v3012_v61 }
 0x59e   : > { %v3437_v41 = vsub.f32 %v3385_v40, %v3409_v43 }
 0x5fa   : > { %v2849_v15 = vpop.permute.xlu1 %2848 }
 0x5fb   : > { %v2851_v0 = vsel %vm1638_vm6, %v2845_v13, %v2849_v15 }
 0x5fc   : > { %v3055_v16 = vand.u32 4294901760, %v2851_v0 }
 0x5fe   : > { %v3090_v17 = vsub.f32 %v2851_v0, %v3055_v16  ;;  %3056 = vmatpush.msra.mxu2 %v3055_v16  ;;  %3149 = vmatpush.msra.mxu1 %v3055_v16 }
 0x5ff   : > { %3062 = vmatmul.f32.vlgmr.msra.gmra.mxu2 %v5437_v55  ;;  %3153 = vmatmul.f32.vlgmr.msra.gmra.mxu1 %v5427_v48 }
 0x600   : > { %v3091_v18 = vand.u32 4294901760, %v3090_v17  ;;  %3121 = vmatpush.msra.mxu0 %v3090_v17 }
 0x601   : > { %3124 = vmatmul.f32.vlgmr.msra.gmra.mxu0 %v5423_v46 }
 0x602   : > { %v3092_v19 = vsub.f32 %v3090_v17, %v3091_v18  ;;  %3181 = vmatpush.msrb.mxu2 %v3091_v18 }
 0x604   : > { %v3093_v20 = vand.u32 4294901760, %v3092_v19 }
 0x606   : > { %3094 = vmatpush.msra.mxu3 %v3093_v20 }
 0x607   : > { %3070 = vmatmul.f32.gmra.mxu2 %v5447_v63  ;;  %3096 = vmatmul.f32.vlgmr.msra.gmra.mxu3 %v5417_v45 }
 0x608   : > { %3207 = vmatpush.msrb.mxu3 %v3055_v16  ;;  %3159 = vmatmul.f32.gmra.mxu1 %v5440_v56 }
 0x609   : > { %3129 = vmatmul.f32.gmra.mxu0 %v5434_v52 }
 0x60f   : > { %3100 = vmatmul.f32.gmra.mxu3 %v5429_v50  ;;  %3183 = vmatmul.f32.vlgmr.msrb.gmra.mxu2 %v5417_v45 }
 0x617   : > { %3187 = vmatmul.f32.gmra.mxu2 %v5429_v50  ;;  %3209 = vmatmul.f32.vlgmr.msrb.gmra.mxu3 %v5417_v45 }
 0x61f   : > { %3213 = vmatmul.f32.gmra.mxu3 %v5429_v50 }
 0x67c   : > { %v3154_v3 = vpop.f32.mrf.mxu1 }
 0x67e   : > { %v3125_v60 = vpop.f32.mrf.mxu0 }
 0x682   : > { %v3063_v36 = vpop.f32.mrf.mxu2 }
 0x683   : > { %v3064_v59 = vadd.f32 %v3063_v36, %v3034_v54 }
 0x685   : > { %v3160_v13 = vpop.f32.mrf.mxu1 }
 0x686   : > { %v3130_v9 = vpop.f32.mrf.mxu0 }
 0x68a   : > { %v3071_v47 = vpop.f32.mrf.mxu2  ;;  %v3097_v51 = vpop.f32.mrf.mxu3 }
 0x68b   : > { %v3098_v1 = vadd.f32 %v3097_v51, %v3064_v59  ;;  %v3072_v6 = vadd.f32 %v3071_v47, %v3038_v5  ;;  %v3411_v47 = vand.u32 4294901760, %v3384_v44 }
 0x68d   : > { %v3126_v62 = vadd.f32 %v3125_v60, %v3098_v1  ;;  %v3443_v51 = vsub.f32 %v3384_v44, %v3411_v47  ;;  %v3387_v1 = vld [vmem:[#allocation3 + $0x18] sm:$0xff] }
 0x68f   : > { %v3155_v7 = vadd.f32 %v3154_v3, %v3126_v62  ;;  %v3444_v58 = vand.u32 4294901760, %v3443_v51  ;;  %v3571_v3 = vand.u32 4294901760, %v3387_v1 }
 0x691   : > { %v3445_v60 = vsub.f32 %v3443_v51, %v3444_v58  ;;  %v3599_v5 = vsub.f32 %v3387_v1, %v3571_v3 }
 0x692   : > { %v3101_v4 = vpop.f32.mrf.mxu3  ;;  %v3184_v2 = vpop.f32.mrf.mxu2 }
 0x693   : > { %v3102_v8 = vadd.f32 %v3101_v4, %v3072_v6  ;;  %v3185_v10 = vadd.f32 %v3184_v2, %v3155_v7  ;;  %v3446_v61 = vand.u32 4294901760, %v3445_v60  ;;  %v3386_v4 = vld [vmem:[#allocation3 + $0x10] sm:$0xff]  ;;  %v3600_v2 = vand.u32 4294901760, %v3599_v5 }
 0x694   : > { %v3573_v62 = vand.u32 4294901760, %v3386_v4 }
 0x695   : > { %v3131_v11 = vadd.f32 %v3130_v9, %v3102_v8  ;;  %v3601_v7 = vsub.f32 %v3599_v5, %v3600_v2 }
 0x696   : > { %v3605_v6 = vsub.f32 %v3386_v4, %v3573_v62 }
 0x697   : > { %v3161_v0 = vadd.f32 %v3160_v13, %v3131_v11  ;;  %v3602_v9 = vand.u32 4294901760, %v3601_v7  ;;  %v3389_v11 = vld [vmem:[#allocation3 + $0x28] sm:$0xff] }
 0x698   : > { %v3606_v8 = vand.u32 4294901760, %v3605_v6  ;;  %v5604_v13 = vand.u32 4294901760, %v3389_v11 }
 0x69a   : > { %v3210_v53 = vpop.f32.mrf.mxu3  ;;  %v3188_v15 = vpop.f32.mrf.mxu2 }
 0x69b   : > { %v3211_v12 = vadd.f32 %v3210_v53, %v3185_v10  ;;  %v3189_v16 = vadd.f32 %v3188_v15, %v3161_v0  ;;  %v3607_v10 = vsub.f32 %v3605_v6, %v3606_v8  ;;  %v5609_v0 = vsub.f32 %v3389_v11, %v5604_v13 }
 0x69d   : > { %v5589_v14 = vmax.f32 %v3211_v12, 0.0  ;;  %v3608_v53 = vand.u32 4294901760, %v3607_v10  ;;  %v3388_v12 = vld [vmem:[#allocation3 + $0x20] sm:$0xff] }
 0x69e   : > { %v5606_v15 = vand.u32 4294901760, %v3388_v12 }
 0x69f   : > { %v3235_v17 = vand.u32 4294901760, %v5589_v14 }
 0x6a1   : > { %v3267_v21 = vsub.f32 %v5589_v14, %v3235_v17 }
 0x6a2   : > { %v3214_v18 = vpop.f32.mrf.mxu3 }
 0x6a3   : > { %v3215_v19 = vadd.f32 %v3214_v18, %v3189_v16  ;;  %v3268_v24 = vand.u32 4294901760, %v3267_v21 }
 0x6a5   : > { %v5592_v20 = vmax.f32 %v3215_v19, 0.0  ;;  %v3269_v27 = vsub.f32 %v3267_v21, %v3268_v24 }
 0x6a7   : > { %v3233_v22 = vand.u32 4294901760, %v5592_v20  ;;  %v3270_v29 = vand.u32 4294901760, %v3269_v27 }
 0x6a9   : > { %v3261_v23 = vsub.f32 %v5592_v20, %v3233_v22  ;;  %3234 = vmatpush.msrb.mxu0 %v3233_v22  ;;  %3318 = vmatpush.msra.mxu3 %v3233_v22 }
 0x6ab   : > { %3236 = vmatpush.msrb.mxu0 %v3235_v17  ;;  %3293 = vmatpush.msra.mxu2 %v3261_v23  ;;  %v3262_v25 = vand.u32 4294901760, %v3261_v23 }
 0x6ac   : > { %3320 = vmatpush.msra.mxu3 %v3235_v17  ;;  %3242 = vmatmul.f32.vlgmr.msrb.gmra.mxu0 %v5312_v57 }
 0x6ad   : > { %3296 = vmatpush.msra.mxu2 %v3267_v21  ;;  %3345 = vmatpush.msra.mxu0 %v3262_v25  ;;  %v3263_v26 = vsub.f32 %v3261_v23, %v3262_v25 }
 0x6ae   : > { %3299 = vmatmul.f32.vlgmr.msra.gmra.mxu2 %v5299_v42  ;;  %3324 = vmatmul.f32.vlgmr.msra.gmra.mxu3 %v5303_v49 }
 0x6af   : > { %3349 = vmatpush.msra.mxu0 %v3268_v24  ;;  %v3264_v28 = vand.u32 4294901760, %v3263_v26  ;;  %3410 = vmatpush.msrb.mxu2 %v3409_v43  ;;  %v3391_v24 = vld [vmem:[#allocation3 + $0x38] sm:$0xff] }
 0x6b1   : > { %3265 = vmatpush.msrb.mxu1 %v3264_v28  ;;  %3469 = vmatpush.msrb.mxu0 %v3437_v41 }
 0x6b2   : > { %3412 = vmatpush.msrb.mxu2 %v3411_v47 }
 0x6b3   : > { %3271 = vmatpush.msrb.mxu1 %v3270_v29  ;;  %3472 = vmatpush.msrb.mxu0 %v3443_v51  ;;  %v3390_v29 = vld [vmem:[#allocation3 + $0x30] sm:$0xff]  ;;  %v4058_v51 = vld [vmem:[%s5979_s12] sm:$0xff] }
 0x6b4   : > { %3273 = vmatmul.f32.vlgmr.msrb.gmra.mxu1 %v5294_v38  ;;  %3351 = vmatmul.f32.vlgmr.msra.gmra.mxu0 %v5294_v38 }
 0x6b5   : > { %3370 = vmatpush.msra.mxu1 %v3233_v22  ;;  %3572 = vmatpush.msra.mxu0 %v3571_v3  ;;  %v3762_v22 = vand.u32 4294901760, %v5609_v0 }
 0x6b7   : > { %3372 = vmatpush.msra.mxu1 %v3235_v17  ;;  %3574 = vmatpush.msra.mxu0 %v3573_v62  ;;  %v5612_v17 = vsub.f32 %v3388_v12, %v5606_v15 }
 0x6b9   : > { %3494 = vmatpush.msrb.mxu1 %v3409_v43  ;;  %v3768_v26 = vand.u32 4294901760, %v5612_v17 }
 0x6bb   : > { %3496 = vmatpush.msrb.mxu1 %v3411_v47 }
 0x6bc   : > { %3374 = vmatmul.f32.vlgmr.msra.gmra.mxu1 %v5294_v38  ;;  %v3438_v38 = vand.u32 4294901760, %v3437_v41 }
 0x6bd   : > { %3603 = vmatpush.msra.mxu1 %v3602_v9 }
 0x6be   : > { %v3439_v54 = vsub.f32 %v3437_v41, %v3438_v38  ;;  %3521 = vmatpush.msra.mxu2 %v3438_v38 }
 0x6bf   : > { %3609 = vmatpush.msra.mxu1 %v3608_v53 }
 0x6c0   : > { %v3440_v59 = vand.u32 4294901760, %v3439_v54  ;;  %3525 = vmatpush.msra.mxu2 %v3444_v58 }
 0x6c2   : > { %3441 = vmatpush.msrb.mxu3 %v3440_v59 }
 0x6c4   : > { %3447 = vmatpush.msrb.mxu3 %v3446_v61  ;;  %v4084_v61 = vand.u32 4294901760, %v4058_v51 }
 0x6c6   : > { %3546 = vmatpush.msra.mxu3 %v3409_v43 }
 0x6c8   : > { %3548 = vmatpush.msra.mxu3 %v3411_v47 }
 0x729   : > { %v3243_v57 = vpop.f32.mrf.mxu0 }
 0x731   : > { %v3274_v30 = vpop.f32.mrf.mxu1  ;;  %v3300_v31 = vpop.f32.mrf.mxu2 }
 0x732   : > { %v3275_v32 = vadd.f32 %v3274_v30, %v3243_v57  ;;  %v3325_v42 = vpop.f32.mrf.mxu3  ;;  %v3352_v49 = vpop.f32.mrf.mxu0  ;;  %v3763_v57 = vsub.f32 %v5609_v0, %v3762_v22  ;;  %v5622_v30 = vand.u32 4294901760, %v3391_v24 }
 0x734   : > { %v3301_v33 = vadd.f32 %v3300_v31, %v3275_v32 }
 0x736   : > { %v3326_v34 = vadd.f32 %v3325_v42, %v3301_v33  ;;  %v3769_v42 = vsub.f32 %v5612_v17, %v3768_v26  ;;  %v5627_v33 = vand.u32 4294901760, %v3390_v29 }
 0x738   : > { %v3353_v35 = vadd.f32 %v3352_v49, %v3326_v34  ;;  %v3770_v43 = vand.u32 4294901760, %v3769_v42  ;;  %v5633_v44 = vsub.f32 %v3390_v29, %v5627_v33 }
 0x739   : > { %v3375_v36 = vpop.f32.mrf.mxu1 }
 0x73a   : > { %v3376_v37 = vadd.f32 %v3375_v36, %v3353_v35  ;;  %v3764_v35 = vand.u32 4294901760, %v3763_v57  ;;  %v5630_v36 = vsub.f32 %v3391_v24, %v5622_v30  ;;  %v3930_v58 = vand.u32 4294901760, %v5633_v44 }
 0x73c   : > { %v3379_v39 = vrot.slane %v3376_v37, 4  ;;  %v3924_v38 = vand.u32 4294901760, %v5630_v36 }
 0x73e   : > { %3380 = vrot.lane.b32.xlu2 %v3379_v39, %s5164_s21  ;;  %v3925_v60 = vsub.f32 %v5630_v36, %v3924_v38 }
 0x798   : > { %v3381_v16 = vpop.permute.xlu2 %3380 }
 0x799   : > { %v3383_v18 = vsel %vm961_vm3, %v3376_v37, %v3381_v16  ;;  %v4064_v16 = vsel %vm961_vm3, %v5589_v14, 0 }
 0x79a   : > { %v3393_v19 = vsel %vm793_vm2, %v3383_v18, 0  ;;  %v3554_v21 = vrot.slane %v3383_v18, 1  ;;  %v3716_v40 = vrot.slane %v3383_v18, 2  ;;  %v3878_v47 = vrot.slane %v3383_v18, 3 }
 0x79b   : > { %v3413_v23 = vand.u32 4294901760, %v3393_v19 }
 0x79c   : > { %v3555_v25 = vsel %vm793_vm2, %v3554_v21, 0  ;;  %v3717_v54 = vsel %vm793_vm2, %v3716_v40, 0  ;;  %v3879_v59 = vsel %vm793_vm2, %v3878_v47, 0 }
 0x79d   : > { %v3414_v27 = vsub.f32 %v3393_v19, %v3413_v23  ;;  %v3575_v28 = vand.u32 4294901760, %v3555_v25  ;;  %3449 = vmatmul.f32.vlgmr.msrb.gmra.mxu3 %v3413_v23  ;;  %v3737_v1 = vand.u32 4294901760, %v3717_v54  ;;  %v3899_v4 = vand.u32 4294901760, %v3879_v59 }
 0x79e   : > { %3656 = vmatpush.msrb.mxu3 %v3571_v3  ;;  %v4067_v19 = vsel %vm961_vm3, %v5592_v20, 0 }
 0x79f   : > { %v3415_v31 = vand.u32 4294901760, %v3414_v27  ;;  %v3576_v32 = vsub.f32 %v3555_v25, %v3575_v28  ;;  %3475 = vmatmul.f32.vlgmr.msrb.gmra.mxu0 %v3414_v27  ;;  %v3900_v7 = vsub.f32 %v3879_v59, %v3899_v4 }
 0x7a0   : > { %3658 = vmatpush.msrb.mxu3 %v3573_v62  ;;  %3683 = vmatpush.msrb.mxu0 %v3600_v2  ;;  %v3738_v2 = vsub.f32 %v3717_v54, %v3737_v1 }
 0x7a1   : > { %v3416_v49 = vsub.f32 %v3414_v27, %v3415_v31  ;;  %v3577_v34 = vand.u32 4294901760, %v3576_v32  ;;  %3500 = vmatmul.f32.vlgmr.msrb.gmra.mxu1 %v3415_v31  ;;  %v3901_v10 = vand.u32 4294901760, %v3900_v7 }
 0x7a2   : > { %3687 = vmatpush.msrb.mxu0 %v3606_v8  ;;  %3708 = vmatpush.msrb.mxu1 %v3571_v3  ;;  %v3931_v3 = vsub.f32 %v5633_v44, %v3930_v58  ;;  %v3739_v9 = vand.u32 4294901760, %v3738_v2 }
 0x7a3   : > { %v3417_v37 = vand.u32 4294901760, %v3416_v49  ;;  %v3578_v39 = vsub.f32 %v3576_v32, %v3577_v34  ;;  %v3902_v12 = vsub.f32 %v3900_v7, %v3901_v10 }
 0x7a4   : > { %3710 = vmatpush.msrb.mxu1 %v3573_v62  ;;  %v4119_v62 = vsub.f32 %v4058_v51, %v4084_v61  ;;  %v3740_v11 = vsub.f32 %v3738_v2, %v3739_v9 }
 0x7a5   : > { %3418 = vmatmul.f32.vlgmr.msrb.gmra.mxu2 %v3417_v37  ;;  %3550 = vmatmul.f32.vlgmr.msra.gmra.mxu3 %v3413_v23  ;;  %v3579_v41 = vand.u32 4294901760, %v3578_v39 }
 0x7a6   : > { %3631 = vmatpush.msrb.mxu2 %v3599_v5  ;;  %3765 = vmatpush.msra.mxu3 %v3764_v35  ;;  %v3926_v5 = vand.u32 4294901760, %v3925_v60  ;;  %v4120_v8 = vand.u32 4294901760, %v4119_v62 }
 0x7a7   : > { %3580 = vmatmul.f32.vlgmr.msra.gmra.mxu0 %v3579_v41 }
 0x7a8   : > { %3634 = vmatpush.msrb.mxu2 %v3605_v6  ;;  %3771 = vmatpush.msra.mxu3 %v3770_v43  ;;  %v3932_v6 = vand.u32 4294901760, %v3931_v3  ;;  %v4121_v53 = vsub.f32 %v4119_v62, %v4120_v8 }
 0x7a9   : > { %3611 = vmatmul.f32.vlgmr.msra.gmra.mxu1 %v3575_v28  ;;  %3793 = vmatpush.msra.mxu0 %v5609_v0  ;;  %v3903_v0 = vand.u32 4294901760, %v3902_v12 }
 0x7aa   : > { %3818 = vmatpush.msra.mxu1 %v5604_v13 }
 0x7ab   : > { %3796 = vmatpush.msra.mxu0 %v5612_v17  ;;  %v4086_v17 = vand.u32 4294901760, %v4064_v16 }
 0x7ac   : > { %3820 = vmatpush.msra.mxu1 %v5606_v15 }
 0x7ad   : > { %3527 = vmatmul.f32.vlgmr.msra.gmra.mxu2 %v3413_v23  ;;  %3662 = vmatmul.f32.vlgmr.msrb.gmra.mxu3 %v3577_v34  ;;  %v4087_v18 = vsub.f32 %v4064_v16, %v4086_v17 }
 0x7ae   : > { %3734 = vmatpush.msra.mxu2 %v5604_v13  ;;  %3870 = vmatpush.msrb.mxu3 %v5604_v13  ;;  %v4122_v13 = vand.u32 4294901760, %v4121_v53 }
 0x7af   : > { %3689 = vmatmul.f32.vlgmr.msrb.gmra.mxu0 %v3575_v28  ;;  %v4088_v21 = vand.u32 4294901760, %v4087_v18 }
 0x7b0   : > { %3736 = vmatpush.msra.mxu2 %v5606_v15  ;;  %3872 = vmatpush.msrb.mxu3 %v5606_v15  ;;  %v3741_v15 = vand.u32 4294901760, %v3740_v11 }
 0x7b1   : > { %3712 = vmatmul.f32.vlgmr.msrb.gmra.mxu1 %v3575_v28  ;;  %3896 = vmatpush.msrb.mxu0 %v5622_v30  ;;  %v4089_v14 = vsub.f32 %v4087_v18, %v4088_v21 }
 0x7b2   : > { %3927 = vmatpush.msrb.mxu1 %v3926_v5 }
 0x7b3   : > { %3898 = vmatpush.msrb.mxu0 %v5627_v33  ;;  %v4090_v24 = vand.u32 4294901760, %v4089_v14 }
 0x7b4   : > { %3933 = vmatpush.msrb.mxu1 %v3932_v6 }
 0x7b5   : > { %3637 = vmatmul.f32.vlgmr.msrb.gmra.mxu2 %v3576_v32  ;;  %3773 = vmatmul.f32.vlgmr.msra.gmra.mxu3 %v3737_v1 }
 0x7b6   : > { %3845 = vmatpush.msrb.mxu2 %v3762_v22  ;;  %3980 = vmatpush.msra.mxu3 %v5622_v30  ;;  %v4094_v22 = vand.u32 4294901760, %v4067_v19 }
 0x7b7   : > { %3799 = vmatmul.f32.vlgmr.msra.gmra.mxu0 %v3738_v2 }
 0x7b8   : > { %3849 = vmatpush.msrb.mxu2 %v3768_v26  ;;  %3982 = vmatpush.msra.mxu3 %v5627_v33  ;;  %v4095_v23 = vsub.f32 %v4067_v19, %v4094_v22 }
 0x7b9   : > { %3824 = vmatmul.f32.vlgmr.msra.gmra.mxu1 %v3739_v9  ;;  %4007 = vmatpush.msra.mxu0 %v3924_v38 }
 0x7ba   : > { %4032 = vmatpush.msra.mxu1 %v5622_v30  ;;  %v4096_v25 = vand.u32 4294901760, %v4095_v23 }
 0x7bb   : > { %4011 = vmatpush.msra.mxu0 %v3930_v58 }
 0x7bc   : > { %4034 = vmatpush.msra.mxu1 %v5627_v33  ;;  %v4097_v26 = vsub.f32 %v4095_v23, %v4096_v25 }
 0x7bd   : > { %3742 = vmatmul.f32.vlgmr.msra.gmra.mxu2 %v3741_v15  ;;  %3874 = vmatmul.f32.vlgmr.msrb.gmra.mxu3 %v3737_v1 }
 0x7be   : > { %3955 = vmatpush.msra.mxu2 %v5630_v36  ;;  %4123 = vmatpush.msrb.mxu3 %v4122_v13  ;;  %v4098_v27 = vand.u32 4294901760, %v4097_v26 }
 0x7bf   : > { %3904 = vmatmul.f32.vlgmr.msrb.gmra.mxu0 %v3903_v0 }
 0x7c0   : > { %3958 = vmatpush.msra.mxu2 %v5633_v44  ;;  %4150 = vmatpush.msrb.mxu0 %v4119_v62 }
 0x7c1   : > { %3935 = vmatmul.f32.vlgmr.msrb.gmra.mxu1 %v3899_v4 }
 0x7c2   : > { %4178 = vmatpush.msrb.mxu1 %v4084_v61 }
 0x7c5   : > { %3851 = vmatmul.f32.vlgmr.msrb.gmra.mxu2 %v3737_v1  ;;  %3986 = vmatmul.f32.vlgmr.msra.gmra.mxu3 %v3901_v10 }
 0x7c6   : > { %4085 = vmatpush.msrb.mxu2 %v4084_v61  ;;  %4236 = vmatpush.msra.mxu3 %v4084_v61 }
 0x7c7   : > { %4013 = vmatmul.f32.vlgmr.msra.gmra.mxu0 %v3899_v4 }
 0x7c9   : > { %4036 = vmatmul.f32.vlgmr.msra.gmra.mxu1 %v3899_v4 }
 0x7cd   : > { %3961 = vmatmul.f32.vlgmr.msra.gmra.mxu2 %v3900_v7  ;;  %4125 = vmatmul.f32.vlgmr.msrb.gmra.mxu3 %v4086_v17 }
 0x7ce   : > { %4210 = vmatpush.msra.mxu2 %v4120_v8 }
 0x7cf   : > { %4153 = vmatmul.f32.vlgmr.msrb.gmra.mxu0 %v4087_v18 }
 0x7d1   : > { %4182 = vmatmul.f32.vlgmr.msrb.gmra.mxu1 %v4088_v21 }
 0x7d5   : > { %4091 = vmatmul.f32.vlgmr.msrb.gmra.mxu2 %v4090_v24  ;;  %4129 = vmatmul.f32.gmra.mxu3 %v4094_v22 }
 0x7d7   : > { %4158 = vmatmul.f32.gmra.mxu0 %v4095_v23 }
 0x7d9   : > { %4188 = vmatmul.f32.gmra.mxu1 %v4096_v25 }
 0x7dd   : > { %4099 = vmatmul.f32.gmra.mxu2 %v4098_v27  ;;  %4238 = vmatmul.f32.vlgmr.msra.gmra.mxu3 %v4086_v17 }
 0x7e5   : > { %4212 = vmatmul.f32.vlgmr.msra.gmra.mxu2 %v4086_v17  ;;  %4242 = vmatmul.f32.gmra.mxu3 %v4094_v22 }
 0x7ed   : > { %4216 = vmatmul.f32.gmra.mxu2 %v4094_v22 }
 0x81c   : > { %v3476_v28 = vpop.f32.mrf.mxu0 }
 0x81e   : > { %v3501_v29 = vpop.f32.mrf.mxu1 }
 0x820   : > { %v3450_v20 = vpop.f32.mrf.mxu3 }
 0x824   : > { %v3581_v31 = vpop.f32.mrf.mxu0 }
 0x826   : > { %v3612_v32 = vpop.f32.mrf.mxu1 }
 0x827   : > { %v3613_v43 = vadd.f32 %v3612_v32, %v3581_v31 }
 0x828   : > { %v3419_v57 = vpop.f32.mrf.mxu2  ;;  %v3551_v30 = vpop.f32.mrf.mxu3 }
 0x829   : > { %v3451_v54 = vadd.f32 %v3450_v20, %v3419_v57 }
 0x82b   : > { %v3477_v1 = vadd.f32 %v3476_v28, %v3451_v54 }
 0x82c   : > { %v3690_v49 = vpop.f32.mrf.mxu0 }
 0x82d   : > { %v3502_v2 = vadd.f32 %v3501_v29, %v3477_v1 }
 0x82e   : > { %v3713_v34 = vpop.f32.mrf.mxu1 }
 0x830   : > { %v3528_v42 = vpop.f32.mrf.mxu2  ;;  %v3663_v33 = vpop.f32.mrf.mxu3 }
 0x831   : > { %v3529_v10 = vadd.f32 %v3528_v42, %v3502_v2 }
 0x833   : > { %v3552_v16 = vadd.f32 %v3551_v30, %v3529_v10 }
 0x834   : > { %v3800_v37 = vpop.f32.mrf.mxu0 }
 0x836   : > { %v3825_v40 = vpop.f32.mrf.mxu1 }
 0x838   : > { %v3638_v35 = vpop.f32.mrf.mxu2  ;;  %v3774_v36 = vpop.f32.mrf.mxu3 }
 0x839   : > { %v3639_v41 = vadd.f32 %v3638_v35, %v3613_v43 }
 0x83b   : > { %v3664_v58 = vadd.f32 %v3663_v33, %v3639_v41 }
 0x83c   : > { %v3905_v59 = vpop.f32.mrf.mxu0 }
 0x83d   : > { %v3691_v3 = vadd.f32 %v3690_v49, %v3664_v58 }
 0x83e   : > { %v3936_v60 = vpop.f32.mrf.mxu1 }
 0x83f   : > { %v3937_v5 = vadd.f32 %v3936_v60, %v3905_v59  ;;  %v3714_v6 = vadd.f32 %v3713_v34, %v3691_v3 }
 0x840   : > { %v3743_v39 = vpop.f32.mrf.mxu2  ;;  %v3875_v38 = vpop.f32.mrf.mxu3 }
 0x841   : > { %v3775_v44 = vadd.f32 %v3774_v36, %v3743_v39  ;;  %v4041_v12 = vrot.slane %v3714_v6, 7 }
 0x843   : > { %v3801_v47 = vadd.f32 %v3800_v37, %v3775_v44  ;;  %v4049_v19 = vsel %vm1628_vm4, %v3552_v16, %v4041_v12 }
 0x844   : > { %v4014_v11 = vpop.f32.mrf.mxu0 }
 0x845   : > { %v3826_v61 = vadd.f32 %v3825_v40, %v3801_v47 }
 0x846   : > { %v4037_v15 = vpop.f32.mrf.mxu1 }
 0x848   : > { %v3852_v51 = vpop.f32.mrf.mxu2  ;;  %v3987_v9 = vpop.f32.mrf.mxu3 }
 0x849   : > { %v3853_v4 = vadd.f32 %v3852_v51, %v3826_v61 }
 0x84b   : > { %v3876_v8 = vadd.f32 %v3875_v38, %v3853_v4 }
 0x84d   : > { %v4044_v0 = vrot.slane %v3876_v8, 6 }
 0x84e   : > { %v4183_v30 = vpop.f32.mrf.mxu1 }
 0x84f   : > { %v4050_v21 = vsel %vm612_vm0, %v4049_v19, %v4044_v0 }
 0x850   : > { %v3962_v62 = vpop.f32.mrf.mxu2 }
 0x851   : > { %v3963_v7 = vadd.f32 %v3962_v62, %v3937_v5 }
 0x853   : > { %v3988_v53 = vadd.f32 %v3987_v9, %v3963_v7 }
 0x855   : > { %v4015_v13 = vadd.f32 %v4014_v11, %v3988_v53 }
 0x856   : > { %v4189_v39 = vpop.f32.mrf.mxu1 }
 0x857   : > { %v4038_v17 = vadd.f32 %v4037_v15, %v4015_v13 }
 0x859   : > { %v4047_v18 = vrot.slane %v4038_v17, 5 }
 0x85b   : > { %v4051_v22 = vsel %vm1631_vm5, %v4050_v21, %v4047_v18 }
 0x85c   : > { %v4053_v14 = vrot.slane %v4051_v22, 4 }
 0x85e   : > { %4054 = vrot.lane.b32.xlu2 %v4053_v14, %s5165_s28  ;;  %v4627_v14 = vld [vmem:[%s5983_s16 + $0x70] sm:$0xff] }
 0x8b8   : > { %v4055_v23 = vpop.permute.xlu2 %4054 }
 0x8b9   : > { %v4057_v24 = vsel %vm1638_vm6, %v4051_v22, %v4055_v23  ;;  %v4628_v22 = vld [vmem:[%s5983_s16 + $0x78] sm:$0xff]  ;;  %v4626_v23 = vld [vmem:[%s5983_s16 + $0x68] sm:$0xff] }
 0x8ba   : > { %v4261_v25 = vand.u32 4294901760, %v4057_v24 }
 0x8bc   : > { %v4296_v26 = vsub.f32 %v4057_v24, %v4261_v25  ;;  %4262 = vmatpush.msra.mxu0 %v4261_v25  ;;  %4355 = vmatpush.msrb.mxu3 %v4261_v25 }
 0x8bd   : > { %4268 = vmatmul.f32.vlgmr.msra.gmra.mxu0 %v5437_v55  ;;  %4359 = vmatmul.f32.vlgmr.msrb.gmra.mxu3 %v5427_v48  ;;  %v4126_v48 = vpop.f32.mrf.mxu3  ;;  %v4154_v55 = vpop.f32.mrf.mxu0 }
 0x8be   : > { %v4297_v27 = vand.u32 4294901760, %v4296_v26  ;;  %4327 = vmatpush.msrb.mxu2 %v4296_v26 }
 0x8bf   : > { %4330 = vmatmul.f32.vlgmr.msrb.gmra.mxu2 %v5423_v46  ;;  %v4092_v46 = vpop.f32.mrf.mxu2 }
 0x8c0   : > { %v4298_v20 = vsub.f32 %v4296_v26, %v4297_v27  ;;  %4387 = vmatpush.msrb.mxu0 %v4297_v27  ;;  %v5707_v26 = vand.u32 4294901760, %v4627_v14  ;;  %v5709_v27 = vand.u32 4294901760, %v4626_v23 }
 0x8c2   : > { %v4299_v28 = vand.u32 4294901760, %v4298_v20  ;;  %v4625_v20 = vld [vmem:[%s5983_s16 + $0x60] sm:$0xff] }
 0x8c4   : > { %4300 = vmatpush.msra.mxu1 %v4299_v28  ;;  %v4624_v28 = vld [vmem:[%s5983_s16 + $0x58] sm:$0xff] }
 0x8c5   : > { %4276 = vmatmul.f32.gmra.mxu0 %v5447_v63  ;;  %4302 = vmatmul.f32.vlgmr.msra.gmra.mxu1 %v5417_v45  ;;  %v4130_v29 = vpop.f32.mrf.mxu3 }
 0x8c6   : > { %4413 = vmatpush.msrb.mxu1 %v4261_v25  ;;  %4365 = vmatmul.f32.gmra.mxu3 %v5440_v56  ;;  %v5116_v56 = vld [vmem:[%s5980_s13] ss:$0 sm:$0xff]  ;;  %v5705_v25 = vand.u32 4294901760, %v4628_v22 }
 0x8c7   : > { %4335 = vmatmul.f32.gmra.mxu2 %v5434_v52  ;;  %v4100_v63 = vpop.f32.mrf.mxu2  ;;  %v4423_v52 = vld [vmem:[%s5981_s14] sm:$0xff] }
 0x8c8   : > { %v4449_v57 = vand.u32 4294901760, %v4423_v52  ;;  %v4101_v36 = vadd.f32 %v5116_v56, %v4100_v63  ;;  %v5719_v63 = vand.u32 4294901760, %v4624_v28 }
 0x8ca   : > { %v4484_v31 = vsub.f32 %v4423_v52, %v4449_v57  ;;  %4543 = vmatpush.msra.mxu1 %v4449_v57  ;;  %4450 = vmatpush.msra.mxu2 %v4449_v57  ;;  %v4131_v43 = vadd.f32 %v4130_v29, %v4101_v36  ;;  %v5722_v29 = vsub.f32 %v4628_v22, %v5705_v25 }
 0x8cb   : > { %v5725_v52 = vsub.f32 %v4627_v14, %v5707_v26 }
 0x8cc   : > { %v4485_v32 = vand.u32 4294901760, %v4484_v31  ;;  %4515 = vmatpush.msra.mxu0 %v4484_v31 }
 0x8cd   : > { %4306 = vmatmul.f32.gmra.mxu1 %v5429_v50  ;;  %4389 = vmatmul.f32.vlgmr.msrb.gmra.mxu0 %v5417_v45  ;;  %v4239_v35 = vpop.f32.mrf.mxu3 }
 0x8ce   : > { %v4486_v33 = vsub.f32 %v4484_v31, %v4485_v32  ;;  %4575 = vmatpush.msrb.mxu2 %v4485_v32  ;;  %4634 = vmatpush.msrb.mxu0 %v5705_v25  ;;  %v4684_v32 = vand.u32 4294901760, %v5722_v29 }
 0x8cf   : > { %v4213_v42 = vpop.f32.mrf.mxu2 }
 0x8d0   : > { %v4487_v34 = vand.u32 4294901760, %v4486_v33  ;;  %4636 = vmatpush.msrb.mxu0 %v5707_v26  ;;  %v4685_v36 = vsub.f32 %v5722_v29, %v4684_v32 }
 0x8d2   : > { %4488 = vmatpush.msra.mxu3 %v4487_v34  ;;  %4638 = vmatpush.msrb.mxu0 %v5709_v27 }
 0x8d4   : > { %4601 = vmatpush.msrb.mxu3 %v4449_v57  ;;  %v5728_v57 = vsub.f32 %v4626_v23, %v5709_v27 }
 0x8d5   : > { %4393 = vmatmul.f32.gmra.mxu0 %v5429_v50  ;;  %4415 = vmatmul.f32.vlgmr.msrb.gmra.mxu1 %v5417_v45  ;;  %v4093_v45 = vadd.f32 %v5116_v56, %v4092_v46  ;;  %v4243_v38 = vpop.f32.mrf.mxu3 }
 0x8d6   : > { %v4696_v33 = vand.u32 4294901760, %v5728_v57 }
 0x8d7   : > { %v4127_v49 = vadd.f32 %v4126_v48, %v4093_v45  ;;  %v4217_v41 = vpop.f32.mrf.mxu2  ;;  %v5735_v45 = vsub.f32 %v4624_v28, %v5719_v63 }
 0x8d9   : > { %v4155_v37 = vadd.f32 %v4154_v55, %v4127_v49  ;;  %v5717_v55 = vand.u32 4294901760, %v4625_v20 }
 0x8db   : > { %v4184_v44 = vadd.f32 %v4183_v30, %v4155_v37  ;;  %v5732_v31 = vsub.f32 %v4625_v20, %v5717_v55  ;;  %4640 = vmatpush.msrb.mxu0 %v5717_v55  ;;  %v4617_v20 = vld [vmem:[%s5983_s16 + $0x20] sm:$0xff] }
 0x8dd   : > { %4419 = vmatmul.f32.gmra.mxu1 %v5429_v50  ;;  %v4159_v50 = vpop.f32.mrf.mxu0  ;;  %v4214_v47 = vadd.f32 %v4213_v42, %v4184_v44  ;;  %v4690_v42 = vand.u32 4294901760, %v5725_v52  ;;  %v4686_v44 = vand.u32 4294901760, %v4685_v36  ;;  %4642 = vmatpush.msrb.mxu0 %v5719_v63 }
 0x8de   : > { %v4160_v51 = vadd.f32 %v4159_v50, %v4131_v43 }
 0x8df   : > { %v4240_v59 = vadd.f32 %v4239_v35, %v4214_v47  ;;  %v4702_v35 = vand.u32 4294901760, %v5732_v31  ;;  %v4691_v37 = vsub.f32 %v5725_v52, %v4690_v42  ;;  %4687 = vmatpush.msrb.mxu1 %v4686_v44 }
 0x8e0   : > { %v4190_v60 = vadd.f32 %v4189_v39, %v4160_v51  ;;  %v4697_v39 = vsub.f32 %v5728_v57, %v4696_v33 }
 0x8e1   : > { %v4703_v47 = vsub.f32 %v5732_v31, %v4702_v35 }
 0x8e2   : > { %v4218_v3 = vadd.f32 %v4217_v41, %v4190_v60  ;;  %v4692_v41 = vand.u32 4294901760, %v4691_v37  ;;  %v4698_v51 = vand.u32 4294901760, %v4697_v39 }
 0x8e4   : > { %v4244_v2 = vadd.f32 %v4243_v38, %v4218_v3  ;;  %4693 = vmatpush.msrb.mxu1 %v4692_v41 }
 0x8e6   : > { %4699 = vmatpush.msrb.mxu1 %v4698_v51 }
 0x93a   : > { %v4269_v40 = vpop.f32.mrf.mxu0 }
 0x93b   : > { %v4270_v61 = vadd.f32 %v4269_v40, %v4240_v59  ;;  %v4708_v40 = vand.u32 4294901760, %v5735_v45  ;;  %v4704_v59 = vand.u32 4294901760, %v4703_v47 }
 0x93d   : > { %4705 = vmatpush.msrb.mxu1 %v4704_v59 }
 0x940   : > { %v4360_v5 = vpop.f32.mrf.mxu3 }
 0x942   : > { %v4277_v54 = vpop.f32.mrf.mxu0  ;;  %v4303_v58 = vpop.f32.mrf.mxu1 }
 0x943   : > { %v4331_v1 = vpop.f32.mrf.mxu2  ;;  %v4304_v4 = vadd.f32 %v4303_v58, %v4270_v61  ;;  %v4278_v8 = vadd.f32 %v4277_v54, %v4244_v2  ;;  %v4709_v54 = vsub.f32 %v5735_v45, %v4708_v40  ;;  %v4621_v2 = vld [vmem:[%s5983_s16 + $0x40] sm:$0xff] }
 0x945   : > { %v4332_v6 = vadd.f32 %v4331_v1, %v4304_v4  ;;  %v4710_v61 = vand.u32 4294901760, %v4709_v54  ;;  %v4623_v1 = vld [vmem:[%s5983_s16 + $0x50] sm:$0xff]  ;;  %v4622_v4 = vld [vmem:[%s5983_s16 + $0x48] sm:$0xff] }
 0x946   : > { %v5777_v3 = vand.u32 4294901760, %v4623_v1  ;;  %v4614_v54 = vld [vmem:[%s5983_s16 + $0x8] sm:$0xff] }
 0x947   : > { %v4361_v9 = vadd.f32 %v4360_v5, %v4332_v6  ;;  %4711 = vmatpush.msrb.mxu1 %v4710_v61 }
 0x948   : > { %v5783_v5 = vsub.f32 %v4623_v1, %v5777_v3  ;;  %4644 = vmatpush.msrb.mxu0 %v5777_v3  ;;  %v5899_v1 = vand.u32 4294901760, %v4614_v54 }
 0x949   : > { %v4366_v0 = vpop.f32.mrf.mxu3 }
 0x94a   : > { %v4307_v62 = vpop.f32.mrf.mxu1  ;;  %v4390_v7 = vpop.f32.mrf.mxu0  ;;  %v4714_v6 = vand.u32 4294901760, %v5783_v5 }
 0x94b   : > { %v4308_v10 = vadd.f32 %v4307_v62, %v4278_v8  ;;  %v4336_v53 = vpop.f32.mrf.mxu2  ;;  %v4391_v11 = vadd.f32 %v4390_v7, %v4361_v9  ;;  %v5785_v62 = vand.u32 4294901760, %v4622_v4  ;;  %v5796_v8 = vand.u32 4294901760, %v4621_v2  ;;  %v4620_v9 = vld [vmem:[%s5983_s16 + $0x38] sm:$0xff] }
 0x94d   : > { %v4337_v13 = vadd.f32 %v4336_v53, %v4308_v10  ;;  %v5794_v7 = vsub.f32 %v4622_v4, %v5785_v62  ;;  %4646 = vmatpush.msrb.mxu0 %v5785_v62  ;;  %v4715_v10 = vsub.f32 %v5783_v5, %v4714_v6  ;;  %v4613_v4 = vld [vmem:[%s5983_s16] sm:$0xff] }
 0x94f   : > { %v4367_v19 = vadd.f32 %v4366_v0, %v4337_v13  ;;  %v4720_v53 = vand.u32 4294901760, %v5794_v7  ;;  %4648 = vmatpush.msrb.mxu0 %v5796_v8  ;;  %v4619_v13 = vld [vmem:[%s5983_s16 + $0x30] sm:$0xff] }
 0x951   : > { %v4721_v0 = vsub.f32 %v5794_v7, %v4720_v53 }
 0x952   : > { %v4416_v12 = vpop.f32.mrf.mxu1  ;;  %v4394_v17 = vpop.f32.mrf.mxu0 }
 0x953   : > { %v4417_v15 = vadd.f32 %v4416_v12, %v4391_v11  ;;  %v4395_v24 = vadd.f32 %v4394_v17, %v4367_v19  ;;  %v5809_v11 = vsub.f32 %v4621_v2, %v5796_v8  ;;  %v5811_v12 = vand.u32 4294901760, %v4620_v9  ;;  %v4618_v19 = vld [vmem:[%s5983_s16 + $0x28] sm:$0xff] }
 0x954   : > { %v5838_v23 = vand.u32 4294901760, %v4618_v19 }
 0x955   : > { %v4429_v16 = vsel %vm961_vm3, %v4417_v15, 0  ;;  %v4716_v15 = vand.u32 4294901760, %v4715_v10  ;;  %v5824_v17 = vsub.f32 %v4620_v9, %v5811_v12  ;;  %4650 = vmatpush.msrb.mxu0 %v5811_v12 }
 0x956   : > { %v5692_v18 = vand.u32 4294901760, %v4429_v16 }
 0x957   : > { %4717 = vmatpush.msrb.mxu1 %v4716_v15  ;;  %v4732_v14 = vand.u32 4294901760, %v5824_v17  ;;  %v4767_v15 = vsub.f32 %v4614_v54, %v5899_v1 }
 0x958   : > { %v4452_v21 = vsub.f32 %v4429_v16, %v5692_v18  ;;  %4490 = vmatmul.f32.vlgmr.msra.gmra.mxu3 %v5692_v18  ;;  %v4726_v16 = vand.u32 4294901760, %v5809_v11 }
 0x959   : > { %4847 = vmatpush.msra.mxu3 %v5705_v25 }
 0x95a   : > { %v4453_v46 = vand.u32 4294901760, %v4452_v21  ;;  %v4420_v48 = vpop.f32.mrf.mxu1  ;;  %4518 = vmatmul.f32.vlgmr.msra.gmra.mxu0 %v4452_v21  ;;  %v4727_v22 = vsub.f32 %v5809_v11, %v4726_v16 }
 0x95b   : > { %v4421_v56 = vadd.f32 %v4420_v48, %v4395_v24  ;;  %4849 = vmatpush.msra.mxu3 %v5707_v26  ;;  %v5853_v48 = vsub.f32 %v4618_v19, %v5838_v23 }
 0x95c   : > { %v4454_v30 = vsub.f32 %v4452_v21, %v4453_v46  ;;  %4547 = vmatmul.f32.vlgmr.msra.gmra.mxu1 %v4453_v46  ;;  %v4722_v21 = vand.u32 4294901760, %v4721_v0  ;;  %v4728_v28 = vand.u32 4294901760, %v4727_v22  ;;  %v4733_v46 = vsub.f32 %v5824_v17, %v4732_v14 }
 0x95d   : > { %v4432_v50 = vsel %vm961_vm3, %v4421_v56, 0  ;;  %4851 = vmatpush.msra.mxu3 %v5709_v27  ;;  %v5855_v56 = vand.u32 4294901760, %v4617_v20  ;;  %v4768_v22 = vand.u32 4294901760, %v4767_v15 }
 0x95e   : > { %v4455_v49 = vand.u32 4294901760, %v4454_v30  ;;  %v4459_v34 = vand.u32 4294901760, %v4432_v50  ;;  %4723 = vmatpush.msrb.mxu1 %v4722_v21 }
 0x95f   : > { %4853 = vmatpush.msra.mxu3 %v5717_v55  ;;  %v5865_v36 = vsub.f32 %v4617_v20, %v5855_v56 }
 0x960   : > { %v4460_v43 = vsub.f32 %v4432_v50, %v4459_v34  ;;  %4456 = vmatmul.f32.vlgmr.msra.gmra.mxu2 %v4455_v49  ;;  %4494 = vmatmul.f32.gmra.mxu3 %v4459_v34  ;;  %v4616_v50 = vld [vmem:[%s5983_s16 + $0x18] sm:$0xff]  ;;  %v4734_v49 = vand.u32 4294901760, %v4733_v46  ;;  %v4769_v46 = vsub.f32 %v4767_v15, %v4768_v22 }
 0x961   : > { %4789 = vmatpush.msra.mxu2 %v5722_v29  ;;  %4855 = vmatpush.msra.mxu3 %v5719_v63  ;;  %v5867_v37 = vand.u32 4294901760, %v4616_v50  ;;  %v4750_v41 = vand.u32 4294901760, %v5865_v36 }
 0x962   : > { %4523 = vmatmul.f32.gmra.mxu0 %v4460_v43  ;;  %v4461_v38 = vand.u32 4294901760, %v4460_v43  ;;  %4729 = vmatpush.msrb.mxu1 %v4728_v28 }
 0x963   : > { %4792 = vmatpush.msra.mxu2 %v5725_v52  ;;  %4857 = vmatpush.msra.mxu3 %v5777_v3  ;;  %v5883_v47 = vsub.f32 %v4616_v50, %v5867_v37  ;;  %v4751_v59 = vsub.f32 %v5865_v36, %v4750_v41 }
 0x964   : > { %4553 = vmatmul.f32.gmra.mxu1 %v4461_v38  ;;  %v4462_v58 = vsub.f32 %v4460_v43, %v4461_v38  ;;  %v4615_v43 = vld [vmem:[%s5983_s16 + $0x10] sm:$0xff] }
 0x965   : > { %4795 = vmatpush.msra.mxu2 %v5728_v57  ;;  %4859 = vmatpush.msra.mxu3 %v5785_v62  ;;  %v5885_v38 = vand.u32 4294901760, %v4615_v43  ;;  %v4752_v2 = vand.u32 4294901760, %v4751_v59 }
 0x966   : > { %v4463_v60 = vand.u32 4294901760, %v4462_v58  ;;  %4735 = vmatpush.msrb.mxu1 %v4734_v49  ;;  %v4770_v49 = vand.u32 4294901760, %v4769_v46 }
 0x967   : > { %4798 = vmatpush.msra.mxu2 %v5732_v31  ;;  %4861 = vmatpush.msra.mxu3 %v5796_v8  ;;  %v4761_v61 = vsub.f32 %v4615_v43, %v5885_v38 }
 0x968   : > { %4464 = vmatmul.f32.gmra.mxu2 %v4463_v60  ;;  %4603 = vmatmul.f32.vlgmr.msrb.gmra.mxu3 %v5692_v18  ;;  %v4756_v60 = vand.u32 4294901760, %v5883_v47 }
 0x969   : > { %4801 = vmatpush.msra.mxu2 %v5735_v45  ;;  %4863 = vmatpush.msra.mxu3 %v5811_v12  ;;  %v4762_v10 = vand.u32 4294901760, %v4761_v61 }
 0x96a   : > { %v4757_v9 = vsub.f32 %v5883_v47, %v4756_v60 }
 0x96b   : > { %4804 = vmatpush.msra.mxu2 %v5783_v5  ;;  %v4763_v19 = vsub.f32 %v4761_v61, %v4762_v10 }
 0x96c   : > { %v4758_v0 = vand.u32 4294901760, %v4757_v9 }
 0x96d   : > { %4807 = vmatpush.msra.mxu2 %v5794_v7  ;;  %v4764_v20 = vand.u32 4294901760, %v4763_v19 }
 0x96f   : > { %4810 = vmatpush.msra.mxu2 %v5809_v11 }
 0x970   : > { %4577 = vmatmul.f32.vlgmr.msrb.gmra.mxu2 %v5692_v18  ;;  %4607 = vmatmul.f32.gmra.mxu3 %v4459_v34  ;;  %v5828_v18 = vand.u32 4294901760, %v4619_v13 }
 0x971   : > { %4813 = vmatpush.msra.mxu2 %v5824_v17 }
 0x972   : > { %v5842_v24 = vsub.f32 %v4619_v13, %v5828_v18  ;;  %4652 = vmatpush.msrb.mxu0 %v5828_v18  ;;  %4865 = vmatpush.msra.mxu3 %v5828_v18  ;;  %v5906_v13 = vand.u32 4294901760, %v4613_v4 }
 0x974   : > { %v4738_v30 = vand.u32 4294901760, %v5842_v24  ;;  %4654 = vmatpush.msrb.mxu0 %v5838_v23  ;;  %4816 = vmatpush.msra.mxu2 %v5842_v24  ;;  %v4773_v21 = vsub.f32 %v4613_v4, %v5906_v13 }
 0x975   : > { %4867 = vmatpush.msra.mxu3 %v5838_v23 }
 0x976   : > { %v4739_v39 = vsub.f32 %v5842_v24, %v4738_v30  ;;  %4656 = vmatpush.msrb.mxu0 %v5855_v56  ;;  %4819 = vmatpush.msra.mxu2 %v5853_v48  ;;  %v4774_v28 = vand.u32 4294901760, %v4773_v21 }
 0x977   : > { %4869 = vmatpush.msra.mxu3 %v5855_v56 }
 0x978   : > { %4581 = vmatmul.f32.gmra.mxu2 %v4459_v34  ;;  %v4744_v34 = vand.u32 4294901760, %v5853_v48  ;;  %v4740_v51 = vand.u32 4294901760, %v4739_v39  ;;  %4658 = vmatpush.msrb.mxu0 %v5867_v37  ;;  %v4775_v50 = vsub.f32 %v4773_v21, %v4774_v28 }
 0x979   : > { %4822 = vmatpush.msra.mxu2 %v5865_v36  ;;  %4871 = vmatpush.msra.mxu3 %v5867_v37 }
 0x97a   : > { %v4745_v44 = vsub.f32 %v5853_v48, %v4744_v34  ;;  %4741 = vmatpush.msrb.mxu1 %v4740_v51  ;;  %4660 = vmatpush.msrb.mxu0 %v5885_v38  ;;  %v4776_v39 = vand.u32 4294901760, %v4775_v50 }
 0x97b   : > { %4825 = vmatpush.msra.mxu2 %v5883_v47  ;;  %4873 = vmatpush.msra.mxu3 %v5885_v38 }
 0x97c   : > { %v4746_v58 = vand.u32 4294901760, %v4745_v44  ;;  %4662 = vmatpush.msrb.mxu0 %v5899_v1 }
 0x97d   : > { %4828 = vmatpush.msra.mxu2 %v4761_v61  ;;  %4875 = vmatpush.msra.mxu3 %v5899_v1 }
 0x97e   : > { %4747 = vmatpush.msrb.mxu1 %v4746_v58  ;;  %4664 = vmatpush.msrb.mxu0 %v5906_v13 }
 0x97f   : > { %4831 = vmatpush.msra.mxu2 %v4767_v15  ;;  %4877 = vmatpush.msra.mxu3 %v5906_v13 }
 0x980   : > { %4753 = vmatpush.msrb.mxu1 %v4752_v2  ;;  %4894 = vmatpush.msra.mxu0 %v4684_v32 }
 0x981   : > { %4834 = vmatpush.msra.mxu2 %v4773_v21 }
 0x982   : > { %4759 = vmatpush.msrb.mxu1 %v4758_v0  ;;  %4898 = vmatpush.msra.mxu0 %v4690_v42 }
 0x984   : > { %4765 = vmatpush.msrb.mxu1 %v4764_v20  ;;  %4902 = vmatpush.msra.mxu0 %v4696_v33 }
 0x986   : > { %4771 = vmatpush.msrb.mxu1 %v4770_v49  ;;  %4906 = vmatpush.msra.mxu0 %v4702_v35 }
 0x988   : > { %4777 = vmatpush.msrb.mxu1 %v4776_v39  ;;  %4910 = vmatpush.msra.mxu0 %v4708_v40 }
 0x98a   : > { %4965 = vmatpush.msra.mxu1 %v5705_v25  ;;  %4914 = vmatpush.msra.mxu0 %v4714_v6 }
 0x98c   : > { %4967 = vmatpush.msra.mxu1 %v5707_v26  ;;  %4918 = vmatpush.msra.mxu0 %v4720_v53  ;;  %v5117_v26 = vld [vmem:[%s5982_s15] ss:$0 sm:$0xff] }
 0x98e   : > { %4969 = vmatpush.msra.mxu1 %v5709_v27  ;;  %4922 = vmatpush.msra.mxu0 %v4726_v16 }
 0x990   : > { %4971 = vmatpush.msra.mxu1 %v5717_v55  ;;  %4926 = vmatpush.msra.mxu0 %v4732_v14 }
 0x992   : > { %4973 = vmatpush.msra.mxu1 %v5719_v63  ;;  %4930 = vmatpush.msra.mxu0 %v4738_v30 }
 0x994   : > { %4975 = vmatpush.msra.mxu1 %v5777_v3  ;;  %4934 = vmatpush.msra.mxu0 %v4744_v34 }
 0x996   : > { %4977 = vmatpush.msra.mxu1 %v5785_v62  ;;  %4938 = vmatpush.msra.mxu0 %v4750_v41  ;;  %v5118_v41 = vld [vmem:[#allocation2] ss:$0 sm:$0xff] }
 0x998   : > { %4979 = vmatpush.msra.mxu1 %v5796_v8  ;;  %4942 = vmatpush.msra.mxu0 %v4756_v60 }
 0x99a   : > { %4981 = vmatpush.msra.mxu1 %v5811_v12  ;;  %4946 = vmatpush.msra.mxu0 %v4762_v10 }
 0x99c   : > { %4983 = vmatpush.msra.mxu1 %v5828_v18  ;;  %4950 = vmatpush.msra.mxu0 %v4768_v22 }
 0x99e   : > { %4985 = vmatpush.msra.mxu1 %v5838_v23  ;;  %4954 = vmatpush.msra.mxu0 %v4774_v28 }
 0x9a0   : > { %4987 = vmatpush.msra.mxu1 %v5855_v56 }
 0x9a2   : > { %4989 = vmatpush.msra.mxu1 %v5867_v37 }
 0x9a4   : > { %4991 = vmatpush.msra.mxu1 %v5885_v38 }
 0x9a6   : > { %4993 = vmatpush.msra.mxu1 %v5899_v1 }
 0x9a8   : > { %4995 = vmatpush.msra.mxu1 %v5906_v13 }
 0x9d7   : > { %v4519_v52 = vpop.f32.mrf.mxu0 }
 0x9d9   : > { %v4548_v32 = vpop.f32.mrf.mxu1 }
 0x9db   : > { %v4491_v25 = vpop.f32.mrf.mxu3 }
 0x9df   : > { %v4524_v5 = vpop.f32.mrf.mxu0 }
 0x9e1   : > { %v4554_v8 = vpop.f32.mrf.mxu1 }
 0x9e3   : > { %v4457_v27 = vpop.f32.mrf.mxu2  ;;  %v4495_v63 = vpop.f32.mrf.mxu3 }
 0x9e4   : > { %v4458_v55 = vadd.f32 %v5117_v26, %v4457_v27 }
 0x9e6   : > { %v4492_v29 = vadd.f32 %v4491_v25, %v4458_v55 }
 0x9e8   : > { %v4520_v45 = vadd.f32 %v4519_v52, %v4492_v29 }
 0x9ea   : > { %v4549_v33 = vadd.f32 %v4548_v32, %v4520_v45 }
 0x9eb   : > { %v4465_v57 = vpop.f32.mrf.mxu2  ;;  %v4604_v35 = vpop.f32.mrf.mxu3 }
 0x9ec   : > { %v4466_v31 = vadd.f32 %v5117_v26, %v4465_v57 }
 0x9ee   : > { %v4496_v42 = vadd.f32 %v4495_v63, %v4466_v31 }
 0x9f0   : > { %v4525_v6 = vadd.f32 %v4524_v5, %v4496_v42 }
 0x9f2   : > { %v4555_v11 = vadd.f32 %v4554_v8, %v4525_v6 }
 0x9f3   : > { %v4578_v40 = vpop.f32.mrf.mxu2  ;;  %v4608_v18 = vpop.f32.mrf.mxu3 }
 0x9f4   : > { %v4579_v3 = vadd.f32 %v4578_v40, %v4549_v33 }
 0x9f6   : > { %v4605_v62 = vadd.f32 %v4604_v35, %v4579_v3 }
 0x9f8   : > { %v4611_v7 = vmax.f32 %v4605_v62, 0.0 }
 0x9fa   : > { %v4665_v53 = vand.u32 4294901760, %v4611_v7 }
 0x9fb   : > { %v4582_v12 = vpop.f32.mrf.mxu2 }
 0x9fc   : > { %v4666_v16 = vsub.f32 %v4611_v7, %v4665_v53  ;;  %v4583_v17 = vadd.f32 %v4582_v12, %v4555_v11  ;;  %4779 = vmatmul.f32.vlgmr.msrb.gmra.mxu1 %v4665_v53 }
 0x9fe   : > { %v4667_v14 = vand.u32 4294901760, %v4666_v16  ;;  %v4609_v23 = vadd.f32 %v4608_v18, %v4583_v17  ;;  %4837 = vmatmul.f32.vlgmr.msra.gmra.mxu2 %v4666_v16 }
 0xa00   : > { %v4668_v24 = vsub.f32 %v4666_v16, %v4667_v14  ;;  %v4612_v48 = vmax.f32 %v4609_v23, 0.0  ;;  %4881 = vmatmul.f32.vlgmr.msra.gmra.mxu3 %v4667_v14 }
 0xa02   : > { %v4669_v56 = vand.u32 4294901760, %v4668_v24  ;;  %v4673_v30 = vand.u32 4294901760, %v4612_v48 }
 0xa04   : > { %4670 = vmatmul.f32.vlgmr.msrb.gmra.mxu0 %v4669_v56  ;;  %4783 = vmatmul.f32.gmra.mxu1 %v4673_v30  ;;  %v4674_v34 = vsub.f32 %v4612_v48, %v4673_v30 }
 0xa06   : > { %4842 = vmatmul.f32.gmra.mxu2 %v4674_v34  ;;  %v4675_v36 = vand.u32 4294901760, %v4674_v34 }
 0xa08   : > { %4887 = vmatmul.f32.gmra.mxu3 %v4675_v36  ;;  %v4676_v37 = vsub.f32 %v4674_v34, %v4675_v36 }
 0xa0a   : > { %v4677_v43 = vand.u32 4294901760, %v4676_v37 }
 0xa0c   : > { %4678 = vmatmul.f32.gmra.mxu0 %v4677_v43  ;;  %4997 = vmatmul.f32.vlgmr.msra.gmra.mxu1 %v4665_v53 }
 0xa14   : > { %4956 = vmatmul.f32.vlgmr.msra.gmra.mxu0 %v4665_v53  ;;  %5001 = vmatmul.f32.gmra.mxu1 %v4673_v30 }
 0xa1c   : > { %4960 = vmatmul.f32.gmra.mxu0 %v4673_v30 }
 0xa79   : > { %v4780_v44 = vpop.f32.mrf.mxu1 }
 0xa81   : > { %v4671_v47 = vpop.f32.mrf.mxu0  ;;  %v4784_v51 = vpop.f32.mrf.mxu1 }
 0xa82   : > { %v4672_v38 = vadd.f32 %v5118_v41, %v4671_v47  ;;  %v4838_v58 = vpop.f32.mrf.mxu2 }
 0xa83   : > { %v4882_v1 = vpop.f32.mrf.mxu3 }
 0xa84   : > { %v4781_v54 = vadd.f32 %v4780_v44, %v4672_v38 }
 0xa86   : > { %v4839_v60 = vadd.f32 %v4838_v58, %v4781_v54 }
 0xa88   : > { %v4883_v4 = vadd.f32 %v4882_v1, %v4839_v60 }
 0xa89   : > { %v4679_v59 = vpop.f32.mrf.mxu0  ;;  %v4998_v9 = vpop.f32.mrf.mxu1 }
 0xa8a   : > { %v4680_v61 = vadd.f32 %v5118_v41, %v4679_v59  ;;  %v4843_v15 = vpop.f32.mrf.mxu2 }
 0xa8b   : > { %v4888_v21 = vpop.f32.mrf.mxu3 }
 0xa8c   : > { %v4785_v2 = vadd.f32 %v4784_v51, %v4680_v61 }
 0xa8e   : > { %v4844_v0 = vadd.f32 %v4843_v15, %v4785_v2 }
 0xa90   : > { %v4889_v22 = vadd.f32 %v4888_v21, %v4844_v0 }
 0xa91   : > { %v4957_v10 = vpop.f32.mrf.mxu0  ;;  %v5002_v46 = vpop.f32.mrf.mxu1 }
 0xa92   : > { %v4958_v13 = vadd.f32 %v4957_v10, %v4883_v4 }
 0xa94   : > { %v4999_v19 = vadd.f32 %v4998_v9, %v4958_v13 }
 0xa96   : > { %5006 = vst.msk [vmem:[%s594_s30] sm:$0xff] %vm5005_vm7, %v4999_v19 }
 0xa99   : > { %v4961_v20 = vpop.f32.mrf.mxu0 }
 0xa9a   : > { %v4962_v28 = vadd.f32 %v4961_v20, %v4889_v22 }
 0xa9c   : > { %v5003_v50 = vadd.f32 %v5002_v46, %v4962_v28 }
 0xa9e   : > { %5007 = vst.msk [vmem:[%s594_s30 + $0x8] sm:$0xff] %vm5005_vm7, %v5003_v50 }
 0xa9f PF: > { %s31_s29 = sadd.s32 1, %s5159_s29  }
 0xaa0   : > { %p28_p7 = scmp.ge.s32.totalorder %s31_s29, 4  }
 0xaa2   :  { %30 = sbr.rel (!%p28_p7) target bundleno = 5 (0x5), region = 127 }
 0xaa7   :  { %5029 = vsyncpa [#allocation4], 1 }
 0xaa8   :  { %5031 = vsyncpa [#allocation4 + $0x1], 1 }

</bundles_post_ra>
